<compile_context>
chip_gen: v6e
topology: v6e:2x2x1
jax: 0.10.0
libtpu: 0.0.40
codegen_flags: <defaults>
</compile_context>

<pallas_src>
import functools

import jax
import jax.numpy as jnp
from jax.experimental import pallas as pl
from jax.experimental.pallas import tpu as pltpu

_LANE = 128


def _reduce_channels_kernel(x_ref, w1_ref, b1_ref, w2_ref, b2_ref, o_ref, *,
                            sub_rows):
    # x_ref : (1, Cin,  TR, 128) VMEM tile
    # o_ref : (1, Cmid, TR, 128) VMEM tile
    # w1_ref: (Cin, Cmid) SMEM f32, b1_ref: (Cmid,) SMEM f32
    # w2_ref: (Cmid, Cmid) SMEM f32, b2_ref: (Cmid,) SMEM f32
    cin = x_ref.shape[1]
    cmid = o_ref.shape[1]
    tr = x_ref.shape[2]

    def _process(row0, nrows):
        # Load the input sub-chunk planes once; compute in f32 regardless of I/O dtype.
        xs = [x_ref[0, c, pl.ds(row0, nrows), :].astype(jnp.float32)
              for c in range(cin)]
        # conv1 (1x1) + ReLU -- unrolled VPU broadcast-FMAs.
        hs = []
        for m in range(cmid):
            acc = w1_ref[0, m] * xs[0]
            for c in range(1, cin):
                acc = acc + w1_ref[c, m] * xs[c]
            hs.append(jnp.maximum(acc + b1_ref[m], 0.0))
        # conv2 (1x1) + ReLU -- store each output-channel sub-chunk as it is produced.
        for m in range(cmid):
            acc = w2_ref[0, m] * hs[0]
            for c in range(1, cmid):
                acc = acc + w2_ref[c, m] * hs[c]
            o_ref[0, m, pl.ds(row0, nrows), :] = (
                jnp.maximum(acc + b2_ref[m], 0.0).astype(o_ref.dtype))

    n_full = tr // sub_rows
    rem = tr - n_full * sub_rows

    if n_full > 0:
        def body(i, carry):
            _process(pl.multiple_of(i * sub_rows, sub_rows), sub_rows)
            return carry
        jax.lax.fori_loop(0, n_full, body, 0, unroll=min(4, n_full))
    if rem > 0:
        _process(n_full * sub_rows, rem)


def _choose_tile_rows(r_full, target_rows, sub, n_batch):
    """Pick the spatial tile height (in 128-lane rows)."""
    if r_full <= sub:
        return r_full                                    # tiny: one full-extent block
    target_rows = max(sub, (target_rows // sub) * sub)
    tr = min(target_rows, (r_full // sub) * sub)
    # v7x has 2 TensorCores: keep >=2 grid steps so "parallel" can shard them
    # (no-op on single-TC v5e/v6e).
    if n_batch == 1 and tr >= r_full and r_full >= 2 * sub:
        half = -(-r_full // 2)
        tr = -(-half // sub) * sub
    return tr


def reduce_channels_pallas(x_nchw, w1, b1, w2, b2, *, spatial_tile=65536):
    """x_nchw: (N, Cin, H, W). w1: (Cin, Cmid), b1: (Cmid,), w2: (Cmid, Cmid), b2: (Cmid,)."""
    N, Cin, H, W = x_nchw.shape
    Cmid = w1.shape[1]
    HW = H * W
    dtype = x_nchw.dtype
    itemsize = jnp.dtype(dtype).itemsize
    sub = 16 if itemsize == 2 else 8                     # packed (16,128) tile for bf16

    r_full = -(-HW // _LANE)                             # 128-lane rows covering HW
    HW_pad = r_full * _LANE

    # Cap the tile so in+out double-buffered VMEM stays well under the 32 MiB
    # default scoped limit (and v7x's 64 MiB physical VMEM).
    target_rows = max(sub, spatial_tile // _LANE)
    max_rows_vmem = (24 * 1024 * 1024) // ((Cin + Cmid) * _LANE * itemsize * 2)
    target_rows = min(target_rows, max(sub, max_rows_vmem))

    tile_rows = _choose_tile_rows(r_full, target_rows, sub, N)
    grid_r = -(-r_full // tile_rows)                     # trailing partial block is masked by Pallas

    # Only the sub-128 tail of HW is ever padded (no-op when HW % 128 == 0);
    # rows are NOT padded up to a tile_rows multiple (no extra HBM passes).
    x_flat = x_nchw.reshape(N, Cin, HW)
    if HW_pad != HW:
        x_flat = jnp.pad(x_flat, ((0, 0), (0, 0), (0, HW_pad - HW)))
    x_blk = x_flat.reshape(N, Cin, r_full, _LANE)

    # Tiny parameter tensors live in SMEM as f32 scalars regardless of the
    # activation dtype (avoids sub-32-bit scalar-indexing lowering issues).
    w1f = jnp.asarray(w1, jnp.float32)
    b1f = jnp.asarray(b1, jnp.float32)
    w2f = jnp.asarray(w2, jnp.float32)
    b2f = jnp.asarray(b2, jnp.float32)

    kernel = functools.partial(_reduce_channels_kernel, sub_rows=sub)

    cost = pl.CostEstimate(
        flops=2 * N * HW * (Cin * Cmid + Cmid * Cmid),
        transcendentals=0,
        bytes_accessed=N * HW * (Cin + Cmid) * itemsize,
    )

    out_blk = pl.pallas_call(
        kernel,
        out_shape=jax.ShapeDtypeStruct((N, Cmid, r_full, _LANE), dtype),
        grid_spec=pltpu.PrefetchScalarGridSpec(
            num_scalar_prefetch=0,
            grid=(N, grid_r),
            in_specs=[
                pl.BlockSpec((1, Cin, tile_rows, _LANE), lambda n, r: (n, 0, r, 0)),
                pl.BlockSpec(memory_space=pltpu.MemorySpace.SMEM),   # w1
                pl.BlockSpec(memory_space=pltpu.MemorySpace.SMEM),   # b1
                pl.BlockSpec(memory_space=pltpu.MemorySpace.SMEM),   # w2
                pl.BlockSpec(memory_space=pltpu.MemorySpace.SMEM),   # b2
            ],
            out_specs=pl.BlockSpec((1, Cmid, tile_rows, _LANE),
                                   lambda n, r: (n, 0, r, 0)),
        ),
        compiler_params=pltpu.CompilerParams(
            dimension_semantics=("parallel", "parallel")),
        cost_estimate=cost,
    )(x_blk, w1f, b1f, w2f, b2f)

    out = out_blk.reshape(N, Cmid, HW_pad)
    if HW_pad != HW:
        out = out[:, :, :HW]
    return out.reshape(N, Cmid, H, W)


def init_params(key, in_channels, out_channels, dtype=jnp.float32):
    """Deterministic init mimicking PyTorch Conv2d defaults (uniform fan_in bounds)."""
    inter = out_channels  # interchannels = out_channels in the module
    k1, k2, k3, k4 = jax.random.split(key, 4)
    bound1 = 1.0 / (in_channels ** 0.5)   # 1x1 kernel -> fan_in = in_channels
    bound2 = 1.0 / (inter ** 0.5)
    # Conv weights stored directly as (Cin, Cout) matmul matrices.
    w1 = jax.random.uniform(k1, (in_channels, inter), dtype, -bound1, bound1)
    b1 = jax.random.uniform(k2, (inter,), dtype, -bound1, bound1)
    w2 = jax.random.uniform(k3, (inter, inter), dtype, -bound2, bound2)
    b2 = jax.random.uniform(k4, (inter,), dtype, -bound2, bound2)
    return w1, b1, w2, b2


def _reference(x_nchw, w1, b1, w2, b2):
    # Pure-JAX reference of the two 1x1 convs + ReLUs (NCHW semantics), f32 math.
    p = jax.lax.Precision.HIGHEST
    xf = x_nchw.astype(jnp.float32)
    h = jnp.einsum("nchw,cd->ndhw", xf, w1.astype(jnp.float32), precision=p)
    h = jnp.maximum(h + b1.astype(jnp.float32)[None, :, None, None], 0.0)
    y = jnp.einsum("ndhw,de->nehw", h, w2.astype(jnp.float32), precision=p)
    return jnp.maximum(y + b2.astype(jnp.float32)[None, :, None, None], 0.0)


if __name__ == "__main__":
    key = jax.random.PRNGKey(0)
    kx, kp, kx2, kx3, kx4 = jax.random.split(key, 5)

    N, Cin, H, W = 2, 4, 16, 16
    Cout = 8

    x = jax.random.normal(kx, (N, Cin, H, W), jnp.float32)
    w1, b1, w2, b2 = init_params(kp, Cin, Cout)

    out = jax.block_until_ready(reduce_channels_pallas(x, w1, b1, w2, b2))
    ref = _reference(x, w1, b1, w2, b2)
    assert out.shape == (N, Cout, H, W)
    assert jnp.allclose(out, ref, atol=1e-5, rtol=1e-5)

    # Ragged spatial size (exercises the sub-128 tail pad + output slice path).
    x2 = jax.random.normal(kx2, (1, Cin, 15, 15), jnp.float32)
    out2 = jax.block_until_ready(reduce_channels_pallas(x2, w1, b1, w2, b2))
    ref2 = _reference(x2, w1, b1, w2, b2)
    assert out2.shape == (1, Cout, 15, 15)
    assert jnp.allclose(out2, ref2, atol=1e-5, rtol=1e-5)

    # Spatial row count not a tile multiple (exercises the masked partial
    # trailing block -- no HBM-side row padding).
    x3 = jax.random.normal(kx3, (1, Cin, 40, 40), jnp.float32)
    out3 = jax.block_until_ready(reduce_channels_pallas(x3, w1, b1, w2, b2))
    ref3 = _reference(x3, w1, b1, w2, b2)
    assert out3.shape == (1, Cout, 40, 40)
    assert jnp.allclose(out3, ref3, atol=1e-5, rtol=1e-5)

    # Larger 128-aligned case: exercises the in-kernel sub-chunk fori_loop and
    # the N==1 two-tile split; also a bf16-I/O smoke test (v5e/v6e bandwidth lever).
    x4 = jax.random.normal(kx4, (1, Cin, 64, 64), jnp.float32)
    out4 = jax.block_until_ready(reduce_channels_pallas(x4, w1, b1, w2, b2))
    ref4 = _reference(x4, w1, b1, w2, b2)
    assert out4.shape == (1, Cout, 64, 64)
    assert jnp.allclose(out4, ref4, atol=1e-5, rtol=1e-5)

    x4b = x4.astype(jnp.bfloat16)
    out4b = jax.block_until_ready(reduce_channels_pallas(x4b, w1, b1, w2, b2))
    ref4b = _reference(x4b, w1, b1, w2, b2)
    assert out4b.dtype == jnp.bfloat16
    assert jnp.allclose(out4b.astype(jnp.float32), ref4b, atol=3e-2, rtol=3e-2)

    print("KERNEL_OK")
</pallas_src>

<mosaic_0001>
module attributes {stable_mosaic.version = 11 : i64} {
  func.func @_reduce_channels_kernel(%arg0: i32, %arg1: i32, %arg2: memref<1x4x2x128xf32, #tpu.memory_space<vmem>>, %arg3: memref<4x8xf32, #tpu.memory_space<smem>>, %arg4: memref<8xf32, #tpu.memory_space<smem>>, %arg5: memref<8x8xf32, #tpu.memory_space<smem>>, %arg6: memref<8xf32, #tpu.memory_space<smem>>, %arg7: memref<1x8x2x128xf32, #tpu.memory_space<vmem>>) attributes {dimension_semantics = [#tpu.dimension_semantics<parallel>, #tpu.dimension_semantics<parallel>], iteration_bounds = array<i64: 2, 1>, scalar_prefetch = 0 : i64, scratch_operands = 0 : i64, tpu.core_type = #tpu.core_type<tc>, window_params = [{transform_indices = @transform_0, window_bounds = array<i64: 1, 4, 2, 128>}, {transform_indices = @transform_1, window_bounds = array<i64: 4, 8>}, {transform_indices = @transform_2, window_bounds = array<i64: 8>}, {transform_indices = @transform_3, window_bounds = array<i64: 8, 8>}, {transform_indices = @transform_4, window_bounds = array<i64: 8>}, {transform_indices = @transform_5, window_bounds = array<i64: 1, 8, 2, 128>}]} {
    %c0 = arith.constant 0 : index
    %c0_0 = arith.constant 0 : index
    %c0_1 = arith.constant 0 : index
    %c0_2 = arith.constant 0 : index
    %0 = vector.load %arg2[%c0, %c0_0, %c0_1, %c0_2] : memref<1x4x2x128xf32, #tpu.memory_space<vmem>>, vector<1x1x2x128xf32>
    %1 = vector.shape_cast %0 : vector<1x1x2x128xf32> to vector<2x128xf32>
    %c0_3 = arith.constant 0 : index
    %c1 = arith.constant 1 : index
    %c0_4 = arith.constant 0 : index
    %c0_5 = arith.constant 0 : index
    %2 = vector.load %arg2[%c0_3, %c1, %c0_4, %c0_5] : memref<1x4x2x128xf32, #tpu.memory_space<vmem>>, vector<1x1x2x128xf32>
    %3 = vector.shape_cast %2 : vector<1x1x2x128xf32> to vector<2x128xf32>
    %c0_6 = arith.constant 0 : index
    %c2 = arith.constant 2 : index
    %c0_7 = arith.constant 0 : index
    %c0_8 = arith.constant 0 : index
    %4 = vector.load %arg2[%c0_6, %c2, %c0_7, %c0_8] : memref<1x4x2x128xf32, #tpu.memory_space<vmem>>, vector<1x1x2x128xf32>
    %5 = vector.shape_cast %4 : vector<1x1x2x128xf32> to vector<2x128xf32>
    %c0_9 = arith.constant 0 : index
    %c3 = arith.constant 3 : index
    %c0_10 = arith.constant 0 : index
    %c0_11 = arith.constant 0 : index
    %6 = vector.load %arg2[%c0_9, %c3, %c0_10, %c0_11] : memref<1x4x2x128xf32, #tpu.memory_space<vmem>>, vector<1x1x2x128xf32>
    %7 = vector.shape_cast %6 : vector<1x1x2x128xf32> to vector<2x128xf32>
    %c0_12 = arith.constant 0 : index
    %c0_13 = arith.constant 0 : index
    %8 = memref.load %arg3[%c0_12, %c0_13] : memref<4x8xf32, #tpu.memory_space<smem>>
    %9 = vector.broadcast %8 : f32 to vector<2x128xf32>
    %10 = arith.mulf %9, %1 : vector<2x128xf32>
    %c1_14 = arith.constant 1 : index
    %c0_15 = arith.constant 0 : index
    %11 = memref.load %arg3[%c1_14, %c0_15] : memref<4x8xf32, #tpu.memory_space<smem>>
    %12 = vector.broadcast %11 : f32 to vector<2x128xf32>
    %13 = arith.mulf %12, %3 : vector<2x128xf32>
    %14 = arith.addf %10, %13 : vector<2x128xf32>
    %c2_16 = arith.constant 2 : index
    %c0_17 = arith.constant 0 : index
    %15 = memref.load %arg3[%c2_16, %c0_17] : memref<4x8xf32, #tpu.memory_space<smem>>
    %16 = vector.broadcast %15 : f32 to vector<2x128xf32>
    %17 = arith.mulf %16, %5 : vector<2x128xf32>
    %18 = arith.addf %14, %17 : vector<2x128xf32>
    %c3_18 = arith.constant 3 : index
    %c0_19 = arith.constant 0 : index
    %19 = memref.load %arg3[%c3_18, %c0_19] : memref<4x8xf32, #tpu.memory_space<smem>>
    %20 = vector.broadcast %19 : f32 to vector<2x128xf32>
    %21 = arith.mulf %20, %7 : vector<2x128xf32>
    %22 = arith.addf %18, %21 : vector<2x128xf32>
    %c0_20 = arith.constant 0 : index
    %23 = memref.load %arg4[%c0_20] : memref<8xf32, #tpu.memory_space<smem>>
    %24 = vector.broadcast %23 : f32 to vector<2x128xf32>
    %25 = arith.addf %22, %24 : vector<2x128xf32>
    %cst = arith.constant 0.000000e+00 : f32
    %26 = vector.broadcast %cst : f32 to vector<2x128xf32>
    %27 = arith.maximumf %25, %26 : vector<2x128xf32>
    %c0_21 = arith.constant 0 : index
    %c1_22 = arith.constant 1 : index
    %28 = memref.load %arg3[%c0_21, %c1_22] : memref<4x8xf32, #tpu.memory_space<smem>>
    %29 = vector.broadcast %28 : f32 to vector<2x128xf32>
    %30 = arith.mulf %29, %1 : vector<2x128xf32>
    %c1_23 = arith.constant 1 : index
    %c1_24 = arith.constant 1 : index
    %31 = memref.load %arg3[%c1_23, %c1_24] : memref<4x8xf32, #tpu.memory_space<smem>>
    %32 = vector.broadcast %31 : f32 to vector<2x128xf32>
    %33 = arith.mulf %32, %3 : vector<2x128xf32>
    %34 = arith.addf %30, %33 : vector<2x128xf32>
    %c2_25 = arith.constant 2 : index
    %c1_26 = arith.constant 1 : index
    %35 = memref.load %arg3[%c2_25, %c1_26] : memref<4x8xf32, #tpu.memory_space<smem>>
    %36 = vector.broadcast %35 : f32 to vector<2x128xf32>
    %37 = arith.mulf %36, %5 : vector<2x128xf32>
    %38 = arith.addf %34, %37 : vector<2x128xf32>
    %c3_27 = arith.constant 3 : index
    %c1_28 = arith.constant 1 : index
    %39 = memref.load %arg3[%c3_27, %c1_28] : memref<4x8xf32, #tpu.memory_space<smem>>
    %40 = vector.broadcast %39 : f32 to vector<2x128xf32>
    %41 = arith.mulf %40, %7 : vector<2x128xf32>
    %42 = arith.addf %38, %41 : vector<2x128xf32>
    %c1_29 = arith.constant 1 : index
    %43 = memref.load %arg4[%c1_29] : memref<8xf32, #tpu.memory_space<smem>>
    %44 = vector.broadcast %43 : f32 to vector<2x128xf32>
    %45 = arith.addf %42, %44 : vector<2x128xf32>
    %cst_30 = arith.constant 0.000000e+00 : f32
    %46 = vector.broadcast %cst_30 : f32 to vector<2x128xf32>
    %47 = arith.maximumf %45, %46 : vector<2x128xf32>
    %c0_31 = arith.constant 0 : index
    %c2_32 = arith.constant 2 : index
    %48 = memref.load %arg3[%c0_31, %c2_32] : memref<4x8xf32, #tpu.memory_space<smem>>
    %49 = vector.broadcast %48 : f32 to vector<2x128xf32>
    %50 = arith.mulf %49, %1 : vector<2x128xf32>
    %c1_33 = arith.constant 1 : index
    %c2_34 = arith.constant 2 : index
    %51 = memref.load %arg3[%c1_33, %c2_34] : memref<4x8xf32, #tpu.memory_space<smem>>
    %52 = vector.broadcast %51 : f32 to vector<2x128xf32>
    %53 = arith.mulf %52, %3 : vector<2x128xf32>
    %54 = arith.addf %50, %53 : vector<2x128xf32>
    %c2_35 = arith.constant 2 : index
    %c2_36 = arith.constant 2 : index
    %55 = memref.load %arg3[%c2_35, %c2_36] : memref<4x8xf32, #tpu.memory_space<smem>>
    %56 = vector.broadcast %55 : f32 to vector<2x128xf32>
    %57 = arith.mulf %56, %5 : vector<2x128xf32>
    %58 = arith.addf %54, %57 : vector<2x128xf32>
    %c3_37 = arith.constant 3 : index
    %c2_38 = arith.constant 2 : index
    %59 = memref.load %arg3[%c3_37, %c2_38] : memref<4x8xf32, #tpu.memory_space<smem>>
    %60 = vector.broadcast %59 : f32 to vector<2x128xf32>
    %61 = arith.mulf %60, %7 : vector<2x128xf32>
    %62 = arith.addf %58, %61 : vector<2x128xf32>
    %c2_39 = arith.constant 2 : index
    %63 = memref.load %arg4[%c2_39] : memref<8xf32, #tpu.memory_space<smem>>
    %64 = vector.broadcast %63 : f32 to vector<2x128xf32>
    %65 = arith.addf %62, %64 : vector<2x128xf32>
    %cst_40 = arith.constant 0.000000e+00 : f32
    %66 = vector.broadcast %cst_40 : f32 to vector<2x128xf32>
    %67 = arith.maximumf %65, %66 : vector<2x128xf32>
    %c0_41 = arith.constant 0 : index
    %c3_42 = arith.constant 3 : index
    %68 = memref.load %arg3[%c0_41, %c3_42] : memref<4x8xf32, #tpu.memory_space<smem>>
    %69 = vector.broadcast %68 : f32 to vector<2x128xf32>
    %70 = arith.mulf %69, %1 : vector<2x128xf32>
    %c1_43 = arith.constant 1 : index
    %c3_44 = arith.constant 3 : index
    %71 = memref.load %arg3[%c1_43, %c3_44] : memref<4x8xf32, #tpu.memory_space<smem>>
    %72 = vector.broadcast %71 : f32 to vector<2x128xf32>
    %73 = arith.mulf %72, %3 : vector<2x128xf32>
    %74 = arith.addf %70, %73 : vector<2x128xf32>
    %c2_45 = arith.constant 2 : index
    %c3_46 = arith.constant 3 : index
    %75 = memref.load %arg3[%c2_45, %c3_46] : memref<4x8xf32, #tpu.memory_space<smem>>
    %76 = vector.broadcast %75 : f32 to vector<2x128xf32>
    %77 = arith.mulf %76, %5 : vector<2x128xf32>
    %78 = arith.addf %74, %77 : vector<2x128xf32>
    %c3_47 = arith.constant 3 : index
    %c3_48 = arith.constant 3 : index
    %79 = memref.load %arg3[%c3_47, %c3_48] : memref<4x8xf32, #tpu.memory_space<smem>>
    %80 = vector.broadcast %79 : f32 to vector<2x128xf32>
    %81 = arith.mulf %80, %7 : vector<2x128xf32>
    %82 = arith.addf %78, %81 : vector<2x128xf32>
    %c3_49 = arith.constant 3 : index
    %83 = memref.load %arg4[%c3_49] : memref<8xf32, #tpu.memory_space<smem>>
    %84 = vector.broadcast %83 : f32 to vector<2x128xf32>
    %85 = arith.addf %82, %84 : vector<2x128xf32>
    %cst_50 = arith.constant 0.000000e+00 : f32
    %86 = vector.broadcast %cst_50 : f32 to vector<2x128xf32>
    %87 = arith.maximumf %85, %86 : vector<2x128xf32>
    %c0_51 = arith.constant 0 : index
    %c4 = arith.constant 4 : index
    %88 = memref.load %arg3[%c0_51, %c4] : memref<4x8xf32, #tpu.memory_space<smem>>
    %89 = vector.broadcast %88 : f32 to vector<2x128xf32>
    %90 = arith.mulf %89, %1 : vector<2x128xf32>
    %c1_52 = arith.constant 1 : index
    %c4_53 = arith.constant 4 : index
    %91 = memref.load %arg3[%c1_52, %c4_53] : memref<4x8xf32, #tpu.memory_space<smem>>
    %92 = vector.broadcast %91 : f32 to vector<2x128xf32>
    %93 = arith.mulf %92, %3 : vector<2x128xf32>
    %94 = arith.addf %90, %93 : vector<2x128xf32>
    %c2_54 = arith.constant 2 : index
    %c4_55 = arith.constant 4 : index
    %95 = memref.load %arg3[%c2_54, %c4_55] : memref<4x8xf32, #tpu.memory_space<smem>>
    %96 = vector.broadcast %95 : f32 to vector<2x128xf32>
    %97 = arith.mulf %96, %5 : vector<2x128xf32>
    %98 = arith.addf %94, %97 : vector<2x128xf32>
    %c3_56 = arith.constant 3 : index
    %c4_57 = arith.constant 4 : index
    %99 = memref.load %arg3[%c3_56, %c4_57] : memref<4x8xf32, #tpu.memory_space<smem>>
    %100 = vector.broadcast %99 : f32 to vector<2x128xf32>
    %101 = arith.mulf %100, %7 : vector<2x128xf32>
    %102 = arith.addf %98, %101 : vector<2x128xf32>
    %c4_58 = arith.constant 4 : index
    %103 = memref.load %arg4[%c4_58] : memref<8xf32, #tpu.memory_space<smem>>
    %104 = vector.broadcast %103 : f32 to vector<2x128xf32>
    %105 = arith.addf %102, %104 : vector<2x128xf32>
    %cst_59 = arith.constant 0.000000e+00 : f32
    %106 = vector.broadcast %cst_59 : f32 to vector<2x128xf32>
    %107 = arith.maximumf %105, %106 : vector<2x128xf32>
    %c0_60 = arith.constant 0 : index
    %c5 = arith.constant 5 : index
    %108 = memref.load %arg3[%c0_60, %c5] : memref<4x8xf32, #tpu.memory_space<smem>>
    %109 = vector.broadcast %108 : f32 to vector<2x128xf32>
    %110 = arith.mulf %109, %1 : vector<2x128xf32>
    %c1_61 = arith.constant 1 : index
    %c5_62 = arith.constant 5 : index
    %111 = memref.load %arg3[%c1_61, %c5_62] : memref<4x8xf32, #tpu.memory_space<smem>>
    %112 = vector.broadcast %111 : f32 to vector<2x128xf32>
    %113 = arith.mulf %112, %3 : vector<2x128xf32>
    %114 = arith.addf %110, %113 : vector<2x128xf32>
    %c2_63 = arith.constant 2 : index
    %c5_64 = arith.constant 5 : index
    %115 = memref.load %arg3[%c2_63, %c5_64] : memref<4x8xf32, #tpu.memory_space<smem>>
    %116 = vector.broadcast %115 : f32 to vector<2x128xf32>
    %117 = arith.mulf %116, %5 : vector<2x128xf32>
    %118 = arith.addf %114, %117 : vector<2x128xf32>
    %c3_65 = arith.constant 3 : index
    %c5_66 = arith.constant 5 : index
    %119 = memref.load %arg3[%c3_65, %c5_66] : memref<4x8xf32, #tpu.memory_space<smem>>
    %120 = vector.broadcast %119 : f32 to vector<2x128xf32>
    %121 = arith.mulf %120, %7 : vector<2x128xf32>
    %122 = arith.addf %118, %121 : vector<2x128xf32>
    %c5_67 = arith.constant 5 : index
    %123 = memref.load %arg4[%c5_67] : memref<8xf32, #tpu.memory_space<smem>>
    %124 = vector.broadcast %123 : f32 to vector<2x128xf32>
    %125 = arith.addf %122, %124 : vector<2x128xf32>
    %cst_68 = arith.constant 0.000000e+00 : f32
    %126 = vector.broadcast %cst_68 : f32 to vector<2x128xf32>
    %127 = arith.maximumf %125, %126 : vector<2x128xf32>
    %c0_69 = arith.constant 0 : index
    %c6 = arith.constant 6 : index
    %128 = memref.load %arg3[%c0_69, %c6] : memref<4x8xf32, #tpu.memory_space<smem>>
    %129 = vector.broadcast %128 : f32 to vector<2x128xf32>
    %130 = arith.mulf %129, %1 : vector<2x128xf32>
    %c1_70 = arith.constant 1 : index
    %c6_71 = arith.constant 6 : index
    %131 = memref.load %arg3[%c1_70, %c6_71] : memref<4x8xf32, #tpu.memory_space<smem>>
    %132 = vector.broadcast %131 : f32 to vector<2x128xf32>
    %133 = arith.mulf %132, %3 : vector<2x128xf32>
    %134 = arith.addf %130, %133 : vector<2x128xf32>
    %c2_72 = arith.constant 2 : index
    %c6_73 = arith.constant 6 : index
    %135 = memref.load %arg3[%c2_72, %c6_73] : memref<4x8xf32, #tpu.memory_space<smem>>
    %136 = vector.broadcast %135 : f32 to vector<2x128xf32>
    %137 = arith.mulf %136, %5 : vector<2x128xf32>
    %138 = arith.addf %134, %137 : vector<2x128xf32>
    %c3_74 = arith.constant 3 : index
    %c6_75 = arith.constant 6 : index
    %139 = memref.load %arg3[%c3_74, %c6_75] : memref<4x8xf32, #tpu.memory_space<smem>>
    %140 = vector.broadcast %139 : f32 to vector<2x128xf32>
    %141 = arith.mulf %140, %7 : vector<2x128xf32>
    %142 = arith.addf %138, %141 : vector<2x128xf32>
    %c6_76 = arith.constant 6 : index
    %143 = memref.load %arg4[%c6_76] : memref<8xf32, #tpu.memory_space<smem>>
    %144 = vector.broadcast %143 : f32 to vector<2x128xf32>
    %145 = arith.addf %142, %144 : vector<2x128xf32>
    %cst_77 = arith.constant 0.000000e+00 : f32
    %146 = vector.broadcast %cst_77 : f32 to vector<2x128xf32>
    %147 = arith.maximumf %145, %146 : vector<2x128xf32>
    %c0_78 = arith.constant 0 : index
    %c7 = arith.constant 7 : index
    %148 = memref.load %arg3[%c0_78, %c7] : memref<4x8xf32, #tpu.memory_space<smem>>
    %149 = vector.broadcast %148 : f32 to vector<2x128xf32>
    %150 = arith.mulf %149, %1 : vector<2x128xf32>
    %c1_79 = arith.constant 1 : index
    %c7_80 = arith.constant 7 : index
    %151 = memref.load %arg3[%c1_79, %c7_80] : memref<4x8xf32, #tpu.memory_space<smem>>
    %152 = vector.broadcast %151 : f32 to vector<2x128xf32>
    %153 = arith.mulf %152, %3 : vector<2x128xf32>
    %154 = arith.addf %150, %153 : vector<2x128xf32>
    %c2_81 = arith.constant 2 : index
    %c7_82 = arith.constant 7 : index
    %155 = memref.load %arg3[%c2_81, %c7_82] : memref<4x8xf32, #tpu.memory_space<smem>>
    %156 = vector.broadcast %155 : f32 to vector<2x128xf32>
    %157 = arith.mulf %156, %5 : vector<2x128xf32>
    %158 = arith.addf %154, %157 : vector<2x128xf32>
    %c3_83 = arith.constant 3 : index
    %c7_84 = arith.constant 7 : index
    %159 = memref.load %arg3[%c3_83, %c7_84] : memref<4x8xf32, #tpu.memory_space<smem>>
    %160 = vector.broadcast %159 : f32 to vector<2x128xf32>
    %161 = arith.mulf %160, %7 : vector<2x128xf32>
    %162 = arith.addf %158, %161 : vector<2x128xf32>
    %c7_85 = arith.constant 7 : index
    %163 = memref.load %arg4[%c7_85] : memref<8xf32, #tpu.memory_space<smem>>
    %164 = vector.broadcast %163 : f32 to vector<2x128xf32>
    %165 = arith.addf %162, %164 : vector<2x128xf32>
    %cst_86 = arith.constant 0.000000e+00 : f32
    %166 = vector.broadcast %cst_86 : f32 to vector<2x128xf32>
    %167 = arith.maximumf %165, %166 : vector<2x128xf32>
    %c0_87 = arith.constant 0 : index
    %c0_88 = arith.constant 0 : index
    %168 = memref.load %arg5[%c0_87, %c0_88] : memref<8x8xf32, #tpu.memory_space<smem>>
    %169 = vector.broadcast %168 : f32 to vector<2x128xf32>
    %170 = arith.mulf %169, %27 : vector<2x128xf32>
    %c1_89 = arith.constant 1 : index
    %c0_90 = arith.constant 0 : index
    %171 = memref.load %arg5[%c1_89, %c0_90] : memref<8x8xf32, #tpu.memory_space<smem>>
    %172 = vector.broadcast %171 : f32 to vector<2x128xf32>
    %173 = arith.mulf %172, %47 : vector<2x128xf32>
    %174 = arith.addf %170, %173 : vector<2x128xf32>
    %c2_91 = arith.constant 2 : index
    %c0_92 = arith.constant 0 : index
    %175 = memref.load %arg5[%c2_91, %c0_92] : memref<8x8xf32, #tpu.memory_space<smem>>
    %176 = vector.broadcast %175 : f32 to vector<2x128xf32>
    %177 = arith.mulf %176, %67 : vector<2x128xf32>
    %178 = arith.addf %174, %177 : vector<2x128xf32>
    %c3_93 = arith.constant 3 : index
    %c0_94 = arith.constant 0 : index
    %179 = memref.load %arg5[%c3_93, %c0_94] : memref<8x8xf32, #tpu.memory_space<smem>>
    %180 = vector.broadcast %179 : f32 to vector<2x128xf32>
    %181 = arith.mulf %180, %87 : vector<2x128xf32>
    %182 = arith.addf %178, %181 : vector<2x128xf32>
    %c4_95 = arith.constant 4 : index
    %c0_96 = arith.constant 0 : index
    %183 = memref.load %arg5[%c4_95, %c0_96] : memref<8x8xf32, #tpu.memory_space<smem>>
    %184 = vector.broadcast %183 : f32 to vector<2x128xf32>
    %185 = arith.mulf %184, %107 : vector<2x128xf32>
    %186 = arith.addf %182, %185 : vector<2x128xf32>
    %c5_97 = arith.constant 5 : index
    %c0_98 = arith.constant 0 : index
    %187 = memref.load %arg5[%c5_97, %c0_98] : memref<8x8xf32, #tpu.memory_space<smem>>
    %188 = vector.broadcast %187 : f32 to vector<2x128xf32>
    %189 = arith.mulf %188, %127 : vector<2x128xf32>
    %190 = arith.addf %186, %189 : vector<2x128xf32>
    %c6_99 = arith.constant 6 : index
    %c0_100 = arith.constant 0 : index
    %191 = memref.load %arg5[%c6_99, %c0_100] : memref<8x8xf32, #tpu.memory_space<smem>>
    %192 = vector.broadcast %191 : f32 to vector<2x128xf32>
    %193 = arith.mulf %192, %147 : vector<2x128xf32>
    %194 = arith.addf %190, %193 : vector<2x128xf32>
    %c7_101 = arith.constant 7 : index
    %c0_102 = arith.constant 0 : index
    %195 = memref.load %arg5[%c7_101, %c0_102] : memref<8x8xf32, #tpu.memory_space<smem>>
    %196 = vector.broadcast %195 : f32 to vector<2x128xf32>
    %197 = arith.mulf %196, %167 : vector<2x128xf32>
    %198 = arith.addf %194, %197 : vector<2x128xf32>
    %c0_103 = arith.constant 0 : index
    %199 = memref.load %arg6[%c0_103] : memref<8xf32, #tpu.memory_space<smem>>
    %200 = vector.broadcast %199 : f32 to vector<2x128xf32>
    %201 = arith.addf %198, %200 : vector<2x128xf32>
    %cst_104 = arith.constant 0.000000e+00 : f32
    %202 = vector.broadcast %cst_104 : f32 to vector<2x128xf32>
    %203 = arith.maximumf %201, %202 : vector<2x128xf32>
    %c0_105 = arith.constant 0 : index
    %c0_106 = arith.constant 0 : index
    %c0_107 = arith.constant 0 : index
    %c0_108 = arith.constant 0 : index
    %204 = vector.load %arg7[%c0_105, %c0_106, %c0_107, %c0_108] : memref<1x8x2x128xf32, #tpu.memory_space<vmem>>, vector<1x1x2x128xf32>
    %205 = vector.shape_cast %204 : vector<1x1x2x128xf32> to vector<2x128xf32>
    %206 = vector.shape_cast %203 : vector<2x128xf32> to vector<1x1x2x128xf32>
    tpu.vector_store %arg7[%c0_105, %c0_106, %c0_107, %c0_108], %206 {strides = array<i32>} : memref<1x8x2x128xf32, #tpu.memory_space<vmem>>, vector<1x1x2x128xf32>,
    %c0_109 = arith.constant 0 : index
    %c1_110 = arith.constant 1 : index
    %207 = memref.load %arg5[%c0_109, %c1_110] : memref<8x8xf32, #tpu.memory_space<smem>>
    %208 = vector.broadcast %207 : f32 to vector<2x128xf32>
    %209 = arith.mulf %208, %27 : vector<2x128xf32>
    %c1_111 = arith.constant 1 : index
    %c1_112 = arith.constant 1 : index
    %210 = memref.load %arg5[%c1_111, %c1_112] : memref<8x8xf32, #tpu.memory_space<smem>>
    %211 = vector.broadcast %210 : f32 to vector<2x128xf32>
    %212 = arith.mulf %211, %47 : vector<2x128xf32>
    %213 = arith.addf %209, %212 : vector<2x128xf32>
    %c2_113 = arith.constant 2 : index
    %c1_114 = arith.constant 1 : index
    %214 = memref.load %arg5[%c2_113, %c1_114] : memref<8x8xf32, #tpu.memory_space<smem>>
    %215 = vector.broadcast %214 : f32 to vector<2x128xf32>
    %216 = arith.mulf %215, %67 : vector<2x128xf32>
    %217 = arith.addf %213, %216 : vector<2x128xf32>
    %c3_115 = arith.constant 3 : index
    %c1_116 = arith.constant 1 : index
    %218 = memref.load %arg5[%c3_115, %c1_116] : memref<8x8xf32, #tpu.memory_space<smem>>
    %219 = vector.broadcast %218 : f32 to vector<2x128xf32>
    %220 = arith.mulf %219, %87 : vector<2x128xf32>
    %221 = arith.addf %217, %220 : vector<2x128xf32>
    %c4_117 = arith.constant 4 : index
    %c1_118 = arith.constant 1 : index
    %222 = memref.load %arg5[%c4_117, %c1_118] : memref<8x8xf32, #tpu.memory_space<smem>>
    %223 = vector.broadcast %222 : f32 to vector<2x128xf32>
    %224 = arith.mulf %223, %107 : vector<2x128xf32>
    %225 = arith.addf %221, %224 : vector<2x128xf32>
    %c5_119 = arith.constant 5 : index
    %c1_120 = arith.constant 1 : index
    %226 = memref.load %arg5[%c5_119, %c1_120] : memref<8x8xf32, #tpu.memory_space<smem>>
    %227 = vector.broadcast %226 : f32 to vector<2x128xf32>
    %228 = arith.mulf %227, %127 : vector<2x128xf32>
    %229 = arith.addf %225, %228 : vector<2x128xf32>
    %c6_121 = arith.constant 6 : index
    %c1_122 = arith.constant 1 : index
    %230 = memref.load %arg5[%c6_121, %c1_122] : memref<8x8xf32, #tpu.memory_space<smem>>
    %231 = vector.broadcast %230 : f32 to vector<2x128xf32>
    %232 = arith.mulf %231, %147 : vector<2x128xf32>
    %233 = arith.addf %229, %232 : vector<2x128xf32>
    %c7_123 = arith.constant 7 : index
    %c1_124 = arith.constant 1 : index
    %234 = memref.load %arg5[%c7_123, %c1_124] : memref<8x8xf32, #tpu.memory_space<smem>>
    %235 = vector.broadcast %234 : f32 to vector<2x128xf32>
    %236 = arith.mulf %235, %167 : vector<2x128xf32>
    %237 = arith.addf %233, %236 : vector<2x128xf32>
    %c1_125 = arith.constant 1 : index
    %238 = memref.load %arg6[%c1_125] : memref<8xf32, #tpu.memory_space<smem>>
    %239 = vector.broadcast %238 : f32 to vector<2x128xf32>
    %240 = arith.addf %237, %239 : vector<2x128xf32>
    %cst_126 = arith.constant 0.000000e+00 : f32
    %241 = vector.broadcast %cst_126 : f32 to vector<2x128xf32>
    %242 = arith.maximumf %240, %241 : vector<2x128xf32>
    %c0_127 = arith.constant 0 : index
    %c1_128 = arith.constant 1 : index
    %c0_129 = arith.constant 0 : index
    %c0_130 = arith.constant 0 : index
    %243 = vector.load %arg7[%c0_127, %c1_128, %c0_129, %c0_130] : memref<1x8x2x128xf32, #tpu.memory_space<vmem>>, vector<1x1x2x128xf32>
    %244 = vector.shape_cast %243 : vector<1x1x2x128xf32> to vector<2x128xf32>
    %245 = vector.shape_cast %242 : vector<2x128xf32> to vector<1x1x2x128xf32>
    tpu.vector_store %arg7[%c0_127, %c1_128, %c0_129, %c0_130], %245 {strides = array<i32>} : memref<1x8x2x128xf32, #tpu.memory_space<vmem>>, vector<1x1x2x128xf32>,
    %c0_131 = arith.constant 0 : index
    %c2_132 = arith.constant 2 : index
    %246 = memref.load %arg5[%c0_131, %c2_132] : memref<8x8xf32, #tpu.memory_space<smem>>
    %247 = vector.broadcast %246 : f32 to vector<2x128xf32>
    %248 = arith.mulf %247, %27 : vector<2x128xf32>
    %c1_133 = arith.constant 1 : index
    %c2_134 = arith.constant 2 : index
    %249 = memref.load %arg5[%c1_133, %c2_134] : memref<8x8xf32, #tpu.memory_space<smem>>
    %250 = vector.broadcast %249 : f32 to vector<2x128xf32>
    %251 = arith.mulf %250, %47 : vector<2x128xf32>
    %252 = arith.addf %248, %251 : vector<2x128xf32>
    %c2_135 = arith.constant 2 : index
    %c2_136 = arith.constant 2 : index
    %253 = memref.load %arg5[%c2_135, %c2_136] : memref<8x8xf32, #tpu.memory_space<smem>>
    %254 = vector.broadcast %253 : f32 to vector<2x128xf32>
    %255 = arith.mulf %254, %67 : vector<2x128xf32>
    %256 = arith.addf %252, %255 : vector<2x128xf32>
    %c3_137 = arith.constant 3 : index
    %c2_138 = arith.constant 2 : index
    %257 = memref.load %arg5[%c3_137, %c2_138] : memref<8x8xf32, #tpu.memory_space<smem>>
    %258 = vector.broadcast %257 : f32 to vector<2x128xf32>
    %259 = arith.mulf %258, %87 : vector<2x128xf32>
    %260 = arith.addf %256, %259 : vector<2x128xf32>
    %c4_139 = arith.constant 4 : index
    %c2_140 = arith.constant 2 : index
    %261 = memref.load %arg5[%c4_139, %c2_140] : memref<8x8xf32, #tpu.memory_space<smem>>
    %262 = vector.broadcast %261 : f32 to vector<2x128xf32>
    %263 = arith.mulf %262, %107 : vector<2x128xf32>
    %264 = arith.addf %260, %263 : vector<2x128xf32>
    %c5_141 = arith.constant 5 : index
    %c2_142 = arith.constant 2 : index
    %265 = memref.load %arg5[%c5_141, %c2_142] : memref<8x8xf32, #tpu.memory_space<smem>>
    %266 = vector.broadcast %265 : f32 to vector<2x128xf32>
    %267 = arith.mulf %266, %127 : vector<2x128xf32>
    %268 = arith.addf %264, %267 : vector<2x128xf32>
    %c6_143 = arith.constant 6 : index
    %c2_144 = arith.constant 2 : index
    %269 = memref.load %arg5[%c6_143, %c2_144] : memref<8x8xf32, #tpu.memory_space<smem>>
    %270 = vector.broadcast %269 : f32 to vector<2x128xf32>
    %271 = arith.mulf %270, %147 : vector<2x128xf32>
    %272 = arith.addf %268, %271 : vector<2x128xf32>
    %c7_145 = arith.constant 7 : index
    %c2_146 = arith.constant 2 : index
    %273 = memref.load %arg5[%c7_145, %c2_146] : memref<8x8xf32, #tpu.memory_space<smem>>
    %274 = vector.broadcast %273 : f32 to vector<2x128xf32>
    %275 = arith.mulf %274, %167 : vector<2x128xf32>
    %276 = arith.addf %272, %275 : vector<2x128xf32>
    %c2_147 = arith.constant 2 : index
    %277 = memref.load %arg6[%c2_147] : memref<8xf32, #tpu.memory_space<smem>>
    %278 = vector.broadcast %277 : f32 to vector<2x128xf32>
    %279 = arith.addf %276, %278 : vector<2x128xf32>
    %cst_148 = arith.constant 0.000000e+00 : f32
    %280 = vector.broadcast %cst_148 : f32 to vector<2x128xf32>
    %281 = arith.maximumf %279, %280 : vector<2x128xf32>
    %c0_149 = arith.constant 0 : index
    %c2_150 = arith.constant 2 : index
    %c0_151 = arith.constant 0 : index
    %c0_152 = arith.constant 0 : index
    %282 = vector.load %arg7[%c0_149, %c2_150, %c0_151, %c0_152] : memref<1x8x2x128xf32, #tpu.memory_space<vmem>>, vector<1x1x2x128xf32>
    %283 = vector.shape_cast %282 : vector<1x1x2x128xf32> to vector<2x128xf32>
    %284 = vector.shape_cast %281 : vector<2x128xf32> to vector<1x1x2x128xf32>
    tpu.vector_store %arg7[%c0_149, %c2_150, %c0_151, %c0_152], %284 {strides = array<i32>} : memref<1x8x2x128xf32, #tpu.memory_space<vmem>>, vector<1x1x2x128xf32>,
    %c0_153 = arith.constant 0 : index
    %c3_154 = arith.constant 3 : index
    %285 = memref.load %arg5[%c0_153, %c3_154] : memref<8x8xf32, #tpu.memory_space<smem>>
    %286 = vector.broadcast %285 : f32 to vector<2x128xf32>
    %287 = arith.mulf %286, %27 : vector<2x128xf32>
    %c1_155 = arith.constant 1 : index
    %c3_156 = arith.constant 3 : index
    %288 = memref.load %arg5[%c1_155, %c3_156] : memref<8x8xf32, #tpu.memory_space<smem>>
    %289 = vector.broadcast %288 : f32 to vector<2x128xf32>
    %290 = arith.mulf %289, %47 : vector<2x128xf32>
    %291 = arith.addf %287, %290 : vector<2x128xf32>
    %c2_157 = arith.constant 2 : index
    %c3_158 = arith.constant 3 : index
    %292 = memref.load %arg5[%c2_157, %c3_158] : memref<8x8xf32, #tpu.memory_space<smem>>
    %293 = vector.broadcast %292 : f32 to vector<2x128xf32>
    %294 = arith.mulf %293, %67 : vector<2x128xf32>
    %295 = arith.addf %291, %294 : vector<2x128xf32>
    %c3_159 = arith.constant 3 : index
    %c3_160 = arith.constant 3 : index
    %296 = memref.load %arg5[%c3_159, %c3_160] : memref<8x8xf32, #tpu.memory_space<smem>>
    %297 = vector.broadcast %296 : f32 to vector<2x128xf32>
    %298 = arith.mulf %297, %87 : vector<2x128xf32>
    %299 = arith.addf %295, %298 : vector<2x128xf32>
    %c4_161 = arith.constant 4 : index
    %c3_162 = arith.constant 3 : index
    %300 = memref.load %arg5[%c4_161, %c3_162] : memref<8x8xf32, #tpu.memory_space<smem>>
    %301 = vector.broadcast %300 : f32 to vector<2x128xf32>
    %302 = arith.mulf %301, %107 : vector<2x128xf32>
    %303 = arith.addf %299, %302 : vector<2x128xf32>
    %c5_163 = arith.constant 5 : index
    %c3_164 = arith.constant 3 : index
    %304 = memref.load %arg5[%c5_163, %c3_164] : memref<8x8xf32, #tpu.memory_space<smem>>
    %305 = vector.broadcast %304 : f32 to vector<2x128xf32>
    %306 = arith.mulf %305, %127 : vector<2x128xf32>
    %307 = arith.addf %303, %306 : vector<2x128xf32>
    %c6_165 = arith.constant 6 : index
    %c3_166 = arith.constant 3 : index
    %308 = memref.load %arg5[%c6_165, %c3_166] : memref<8x8xf32, #tpu.memory_space<smem>>
    %309 = vector.broadcast %308 : f32 to vector<2x128xf32>
    %310 = arith.mulf %309, %147 : vector<2x128xf32>
    %311 = arith.addf %307, %310 : vector<2x128xf32>
    %c7_167 = arith.constant 7 : index
    %c3_168 = arith.constant 3 : index
    %312 = memref.load %arg5[%c7_167, %c3_168] : memref<8x8xf32, #tpu.memory_space<smem>>
    %313 = vector.broadcast %312 : f32 to vector<2x128xf32>
    %314 = arith.mulf %313, %167 : vector<2x128xf32>
    %315 = arith.addf %311, %314 : vector<2x128xf32>
    %c3_169 = arith.constant 3 : index
    %316 = memref.load %arg6[%c3_169] : memref<8xf32, #tpu.memory_space<smem>>
    %317 = vector.broadcast %316 : f32 to vector<2x128xf32>
    %318 = arith.addf %315, %317 : vector<2x128xf32>
    %cst_170 = arith.constant 0.000000e+00 : f32
    %319 = vector.broadcast %cst_170 : f32 to vector<2x128xf32>
    %320 = arith.maximumf %318, %319 : vector<2x128xf32>
    %c0_171 = arith.constant 0 : index
    %c3_172 = arith.constant 3 : index
    %c0_173 = arith.constant 0 : index
    %c0_174 = arith.constant 0 : index
    %321 = vector.load %arg7[%c0_171, %c3_172, %c0_173, %c0_174] : memref<1x8x2x128xf32, #tpu.memory_space<vmem>>, vector<1x1x2x128xf32>
    %322 = vector.shape_cast %321 : vector<1x1x2x128xf32> to vector<2x128xf32>
    %323 = vector.shape_cast %320 : vector<2x128xf32> to vector<1x1x2x128xf32>
    tpu.vector_store %arg7[%c0_171, %c3_172, %c0_173, %c0_174], %323 {strides = array<i32>} : memref<1x8x2x128xf32, #tpu.memory_space<vmem>>, vector<1x1x2x128xf32>,
    %c0_175 = arith.constant 0 : index
    %c4_176 = arith.constant 4 : index
    %324 = memref.load %arg5[%c0_175, %c4_176] : memref<8x8xf32, #tpu.memory_space<smem>>
    %325 = vector.broadcast %324 : f32 to vector<2x128xf32>
    %326 = arith.mulf %325, %27 : vector<2x128xf32>
    %c1_177 = arith.constant 1 : index
    %c4_178 = arith.constant 4 : index
    %327 = memref.load %arg5[%c1_177, %c4_178] : memref<8x8xf32, #tpu.memory_space<smem>>
    %328 = vector.broadcast %327 : f32 to vector<2x128xf32>
    %329 = arith.mulf %328, %47 : vector<2x128xf32>
    %330 = arith.addf %326, %329 : vector<2x128xf32>
    %c2_179 = arith.constant 2 : index
    %c4_180 = arith.constant 4 : index
    %331 = memref.load %arg5[%c2_179, %c4_180] : memref<8x8xf32, #tpu.memory_space<smem>>
    %332 = vector.broadcast %331 : f32 to vector<2x128xf32>
    %333 = arith.mulf %332, %67 : vector<2x128xf32>
    %334 = arith.addf %330, %333 : vector<2x128xf32>
    %c3_181 = arith.constant 3 : index
    %c4_182 = arith.constant 4 : index
    %335 = memref.load %arg5[%c3_181, %c4_182] : memref<8x8xf32, #tpu.memory_space<smem>>
    %336 = vector.broadcast %335 : f32 to vector<2x128xf32>
    %337 = arith.mulf %336, %87 : vector<2x128xf32>
    %338 = arith.addf %334, %337 : vector<2x128xf32>
    %c4_183 = arith.constant 4 : index
    %c4_184 = arith.constant 4 : index
    %339 = memref.load %arg5[%c4_183, %c4_184] : memref<8x8xf32, #tpu.memory_space<smem>>
    %340 = vector.broadcast %339 : f32 to vector<2x128xf32>
    %341 = arith.mulf %340, %107 : vector<2x128xf32>
    %342 = arith.addf %338, %341 : vector<2x128xf32>
    %c5_185 = arith.constant 5 : index
    %c4_186 = arith.constant 4 : index
    %343 = memref.load %arg5[%c5_185, %c4_186] : memref<8x8xf32, #tpu.memory_space<smem>>
    %344 = vector.broadcast %343 : f32 to vector<2x128xf32>
    %345 = arith.mulf %344, %127 : vector<2x128xf32>
    %346 = arith.addf %342, %345 : vector<2x128xf32>
    %c6_187 = arith.constant 6 : index
    %c4_188 = arith.constant 4 : index
    %347 = memref.load %arg5[%c6_187, %c4_188] : memref<8x8xf32, #tpu.memory_space<smem>>
    %348 = vector.broadcast %347 : f32 to vector<2x128xf32>
    %349 = arith.mulf %348, %147 : vector<2x128xf32>
    %350 = arith.addf %346, %349 : vector<2x128xf32>
    %c7_189 = arith.constant 7 : index
    %c4_190 = arith.constant 4 : index
    %351 = memref.load %arg5[%c7_189, %c4_190] : memref<8x8xf32, #tpu.memory_space<smem>>
    %352 = vector.broadcast %351 : f32 to vector<2x128xf32>
    %353 = arith.mulf %352, %167 : vector<2x128xf32>
    %354 = arith.addf %350, %353 : vector<2x128xf32>
    %c4_191 = arith.constant 4 : index
    %355 = memref.load %arg6[%c4_191] : memref<8xf32, #tpu.memory_space<smem>>
    %356 = vector.broadcast %355 : f32 to vector<2x128xf32>
    %357 = arith.addf %354, %356 : vector<2x128xf32>
    %cst_192 = arith.constant 0.000000e+00 : f32
    %358 = vector.broadcast %cst_192 : f32 to vector<2x128xf32>
    %359 = arith.maximumf %357, %358 : vector<2x128xf32>
    %c0_193 = arith.constant 0 : index
    %c4_194 = arith.constant 4 : index
    %c0_195 = arith.constant 0 : index
    %c0_196 = arith.constant 0 : index
    %360 = vector.load %arg7[%c0_193, %c4_194, %c0_195, %c0_196] : memref<1x8x2x128xf32, #tpu.memory_space<vmem>>, vector<1x1x2x128xf32>
    %361 = vector.shape_cast %360 : vector<1x1x2x128xf32> to vector<2x128xf32>
    %362 = vector.shape_cast %359 : vector<2x128xf32> to vector<1x1x2x128xf32>
    tpu.vector_store %arg7[%c0_193, %c4_194, %c0_195, %c0_196], %362 {strides = array<i32>} : memref<1x8x2x128xf32, #tpu.memory_space<vmem>>, vector<1x1x2x128xf32>,
    %c0_197 = arith.constant 0 : index
    %c5_198 = arith.constant 5 : index
    %363 = memref.load %arg5[%c0_197, %c5_198] : memref<8x8xf32, #tpu.memory_space<smem>>
    %364 = vector.broadcast %363 : f32 to vector<2x128xf32>
    %365 = arith.mulf %364, %27 : vector<2x128xf32>
    %c1_199 = arith.constant 1 : index
    %c5_200 = arith.constant 5 : index
    %366 = memref.load %arg5[%c1_199, %c5_200] : memref<8x8xf32, #tpu.memory_space<smem>>
    %367 = vector.broadcast %366 : f32 to vector<2x128xf32>
    %368 = arith.mulf %367, %47 : vector<2x128xf32>
    %369 = arith.addf %365, %368 : vector<2x128xf32>
    %c2_201 = arith.constant 2 : index
    %c5_202 = arith.constant 5 : index
    %370 = memref.load %arg5[%c2_201, %c5_202] : memref<8x8xf32, #tpu.memory_space<smem>>
    %371 = vector.broadcast %370 : f32 to vector<2x128xf32>
    %372 = arith.mulf %371, %67 : vector<2x128xf32>
    %373 = arith.addf %369, %372 : vector<2x128xf32>
    %c3_203 = arith.constant 3 : index
    %c5_204 = arith.constant 5 : index
    %374 = memref.load %arg5[%c3_203, %c5_204] : memref<8x8xf32, #tpu.memory_space<smem>>
    %375 = vector.broadcast %374 : f32 to vector<2x128xf32>
    %376 = arith.mulf %375, %87 : vector<2x128xf32>
    %377 = arith.addf %373, %376 : vector<2x128xf32>
    %c4_205 = arith.constant 4 : index
    %c5_206 = arith.constant 5 : index
    %378 = memref.load %arg5[%c4_205, %c5_206] : memref<8x8xf32, #tpu.memory_space<smem>>
    %379 = vector.broadcast %378 : f32 to vector<2x128xf32>
    %380 = arith.mulf %379, %107 : vector<2x128xf32>
    %381 = arith.addf %377, %380 : vector<2x128xf32>
    %c5_207 = arith.constant 5 : index
    %c5_208 = arith.constant 5 : index
    %382 = memref.load %arg5[%c5_207, %c5_208] : memref<8x8xf32, #tpu.memory_space<smem>>
    %383 = vector.broadcast %382 : f32 to vector<2x128xf32>
    %384 = arith.mulf %383, %127 : vector<2x128xf32>
    %385 = arith.addf %381, %384 : vector<2x128xf32>
    %c6_209 = arith.constant 6 : index
    %c5_210 = arith.constant 5 : index
    %386 = memref.load %arg5[%c6_209, %c5_210] : memref<8x8xf32, #tpu.memory_space<smem>>
    %387 = vector.broadcast %386 : f32 to vector<2x128xf32>
    %388 = arith.mulf %387, %147 : vector<2x128xf32>
    %389 = arith.addf %385, %388 : vector<2x128xf32>
    %c7_211 = arith.constant 7 : index
    %c5_212 = arith.constant 5 : index
    %390 = memref.load %arg5[%c7_211, %c5_212] : memref<8x8xf32, #tpu.memory_space<smem>>
    %391 = vector.broadcast %390 : f32 to vector<2x128xf32>
    %392 = arith.mulf %391, %167 : vector<2x128xf32>
    %393 = arith.addf %389, %392 : vector<2x128xf32>
    %c5_213 = arith.constant 5 : index
    %394 = memref.load %arg6[%c5_213] : memref<8xf32, #tpu.memory_space<smem>>
    %395 = vector.broadcast %394 : f32 to vector<2x128xf32>
    %396 = arith.addf %393, %395 : vector<2x128xf32>
    %cst_214 = arith.constant 0.000000e+00 : f32
    %397 = vector.broadcast %cst_214 : f32 to vector<2x128xf32>
    %398 = arith.maximumf %396, %397 : vector<2x128xf32>
    %c0_215 = arith.constant 0 : index
    %c5_216 = arith.constant 5 : index
    %c0_217 = arith.constant 0 : index
    %c0_218 = arith.constant 0 : index
    %399 = vector.load %arg7[%c0_215, %c5_216, %c0_217, %c0_218] : memref<1x8x2x128xf32, #tpu.memory_space<vmem>>, vector<1x1x2x128xf32>
    %400 = vector.shape_cast %399 : vector<1x1x2x128xf32> to vector<2x128xf32>
    %401 = vector.shape_cast %398 : vector<2x128xf32> to vector<1x1x2x128xf32>
    tpu.vector_store %arg7[%c0_215, %c5_216, %c0_217, %c0_218], %401 {strides = array<i32>} : memref<1x8x2x128xf32, #tpu.memory_space<vmem>>, vector<1x1x2x128xf32>,
    %c0_219 = arith.constant 0 : index
    %c6_220 = arith.constant 6 : index
    %402 = memref.load %arg5[%c0_219, %c6_220] : memref<8x8xf32, #tpu.memory_space<smem>>
    %403 = vector.broadcast %402 : f32 to vector<2x128xf32>
    %404 = arith.mulf %403, %27 : vector<2x128xf32>
    %c1_221 = arith.constant 1 : index
    %c6_222 = arith.constant 6 : index
    %405 = memref.load %arg5[%c1_221, %c6_222] : memref<8x8xf32, #tpu.memory_space<smem>>
    %406 = vector.broadcast %405 : f32 to vector<2x128xf32>
    %407 = arith.mulf %406, %47 : vector<2x128xf32>
    %408 = arith.addf %404, %407 : vector<2x128xf32>
    %c2_223 = arith.constant 2 : index
    %c6_224 = arith.constant 6 : index
    %409 = memref.load %arg5[%c2_223, %c6_224] : memref<8x8xf32, #tpu.memory_space<smem>>
    %410 = vector.broadcast %409 : f32 to vector<2x128xf32>
    %411 = arith.mulf %410, %67 : vector<2x128xf32>
    %412 = arith.addf %408, %411 : vector<2x128xf32>
    %c3_225 = arith.constant 3 : index
    %c6_226 = arith.constant 6 : index
    %413 = memref.load %arg5[%c3_225, %c6_226] : memref<8x8xf32, #tpu.memory_space<smem>>
    %414 = vector.broadcast %413 : f32 to vector<2x128xf32>
    %415 = arith.mulf %414, %87 : vector<2x128xf32>
    %416 = arith.addf %412, %415 : vector<2x128xf32>
    %c4_227 = arith.constant 4 : index
    %c6_228 = arith.constant 6 : index
    %417 = memref.load %arg5[%c4_227, %c6_228] : memref<8x8xf32, #tpu.memory_space<smem>>
    %418 = vector.broadcast %417 : f32 to vector<2x128xf32>
    %419 = arith.mulf %418, %107 : vector<2x128xf32>
    %420 = arith.addf %416, %419 : vector<2x128xf32>
    %c5_229 = arith.constant 5 : index
    %c6_230 = arith.constant 6 : index
    %421 = memref.load %arg5[%c5_229, %c6_230] : memref<8x8xf32, #tpu.memory_space<smem>>
    %422 = vector.broadcast %421 : f32 to vector<2x128xf32>
    %423 = arith.mulf %422, %127 : vector<2x128xf32>
    %424 = arith.addf %420, %423 : vector<2x128xf32>
    %c6_231 = arith.constant 6 : index
    %c6_232 = arith.constant 6 : index
    %425 = memref.load %arg5[%c6_231, %c6_232] : memref<8x8xf32, #tpu.memory_space<smem>>
    %426 = vector.broadcast %425 : f32 to vector<2x128xf32>
    %427 = arith.mulf %426, %147 : vector<2x128xf32>
    %428 = arith.addf %424, %427 : vector<2x128xf32>
    %c7_233 = arith.constant 7 : index
    %c6_234 = arith.constant 6 : index
    %429 = memref.load %arg5[%c7_233, %c6_234] : memref<8x8xf32, #tpu.memory_space<smem>>
    %430 = vector.broadcast %429 : f32 to vector<2x128xf32>
    %431 = arith.mulf %430, %167 : vector<2x128xf32>
    %432 = arith.addf %428, %431 : vector<2x128xf32>
    %c6_235 = arith.constant 6 : index
    %433 = memref.load %arg6[%c6_235] : memref<8xf32, #tpu.memory_space<smem>>
    %434 = vector.broadcast %433 : f32 to vector<2x128xf32>
    %435 = arith.addf %432, %434 : vector<2x128xf32>
    %cst_236 = arith.constant 0.000000e+00 : f32
    %436 = vector.broadcast %cst_236 : f32 to vector<2x128xf32>
    %437 = arith.maximumf %435, %436 : vector<2x128xf32>
    %c0_237 = arith.constant 0 : index
    %c6_238 = arith.constant 6 : index
    %c0_239 = arith.constant 0 : index
    %c0_240 = arith.constant 0 : index
    %438 = vector.load %arg7[%c0_237, %c6_238, %c0_239, %c0_240] : memref<1x8x2x128xf32, #tpu.memory_space<vmem>>, vector<1x1x2x128xf32>
    %439 = vector.shape_cast %438 : vector<1x1x2x128xf32> to vector<2x128xf32>
    %440 = vector.shape_cast %437 : vector<2x128xf32> to vector<1x1x2x128xf32>
    tpu.vector_store %arg7[%c0_237, %c6_238, %c0_239, %c0_240], %440 {strides = array<i32>} : memref<1x8x2x128xf32, #tpu.memory_space<vmem>>, vector<1x1x2x128xf32>,
    %c0_241 = arith.constant 0 : index
    %c7_242 = arith.constant 7 : index
    %441 = memref.load %arg5[%c0_241, %c7_242] : memref<8x8xf32, #tpu.memory_space<smem>>
    %442 = vector.broadcast %441 : f32 to vector<2x128xf32>
    %443 = arith.mulf %442, %27 : vector<2x128xf32>
    %c1_243 = arith.constant 1 : index
    %c7_244 = arith.constant 7 : index
    %444 = memref.load %arg5[%c1_243, %c7_244] : memref<8x8xf32, #tpu.memory_space<smem>>
    %445 = vector.broadcast %444 : f32 to vector<2x128xf32>
    %446 = arith.mulf %445, %47 : vector<2x128xf32>
    %447 = arith.addf %443, %446 : vector<2x128xf32>
    %c2_245 = arith.constant 2 : index
    %c7_246 = arith.constant 7 : index
    %448 = memref.load %arg5[%c2_245, %c7_246] : memref<8x8xf32, #tpu.memory_space<smem>>
    %449 = vector.broadcast %448 : f32 to vector<2x128xf32>
    %450 = arith.mulf %449, %67 : vector<2x128xf32>
    %451 = arith.addf %447, %450 : vector<2x128xf32>
    %c3_247 = arith.constant 3 : index
    %c7_248 = arith.constant 7 : index
    %452 = memref.load %arg5[%c3_247, %c7_248] : memref<8x8xf32, #tpu.memory_space<smem>>
    %453 = vector.broadcast %452 : f32 to vector<2x128xf32>
    %454 = arith.mulf %453, %87 : vector<2x128xf32>
    %455 = arith.addf %451, %454 : vector<2x128xf32>
    %c4_249 = arith.constant 4 : index
    %c7_250 = arith.constant 7 : index
    %456 = memref.load %arg5[%c4_249, %c7_250] : memref<8x8xf32, #tpu.memory_space<smem>>
    %457 = vector.broadcast %456 : f32 to vector<2x128xf32>
    %458 = arith.mulf %457, %107 : vector<2x128xf32>
    %459 = arith.addf %455, %458 : vector<2x128xf32>
    %c5_251 = arith.constant 5 : index
    %c7_252 = arith.constant 7 : index
    %460 = memref.load %arg5[%c5_251, %c7_252] : memref<8x8xf32, #tpu.memory_space<smem>>
    %461 = vector.broadcast %460 : f32 to vector<2x128xf32>
    %462 = arith.mulf %461, %127 : vector<2x128xf32>
    %463 = arith.addf %459, %462 : vector<2x128xf32>
    %c6_253 = arith.constant 6 : index
    %c7_254 = arith.constant 7 : index
    %464 = memref.load %arg5[%c6_253, %c7_254] : memref<8x8xf32, #tpu.memory_space<smem>>
    %465 = vector.broadcast %464 : f32 to vector<2x128xf32>
    %466 = arith.mulf %465, %147 : vector<2x128xf32>
    %467 = arith.addf %463, %466 : vector<2x128xf32>
    %c7_255 = arith.constant 7 : index
    %c7_256 = arith.constant 7 : index
    %468 = memref.load %arg5[%c7_255, %c7_256] : memref<8x8xf32, #tpu.memory_space<smem>>
    %469 = vector.broadcast %468 : f32 to vector<2x128xf32>
    %470 = arith.mulf %469, %167 : vector<2x128xf32>
    %471 = arith.addf %467, %470 : vector<2x128xf32>
    %c7_257 = arith.constant 7 : index
    %472 = memref.load %arg6[%c7_257] : memref<8xf32, #tpu.memory_space<smem>>
    %473 = vector.broadcast %472 : f32 to vector<2x128xf32>
    %474 = arith.addf %471, %473 : vector<2x128xf32>
    %cst_258 = arith.constant 0.000000e+00 : f32
    %475 = vector.broadcast %cst_258 : f32 to vector<2x128xf32>
    %476 = arith.maximumf %474, %475 : vector<2x128xf32>
    %c0_259 = arith.constant 0 : index
    %c7_260 = arith.constant 7 : index
    %c0_261 = arith.constant 0 : index
    %c0_262 = arith.constant 0 : index
    %477 = vector.load %arg7[%c0_259, %c7_260, %c0_261, %c0_262] : memref<1x8x2x128xf32, #tpu.memory_space<vmem>>, vector<1x1x2x128xf32>
    %478 = vector.shape_cast %477 : vector<1x1x2x128xf32> to vector<2x128xf32>
    %479 = vector.shape_cast %476 : vector<2x128xf32> to vector<1x1x2x128xf32>
    tpu.vector_store %arg7[%c0_259, %c7_260, %c0_261, %c0_262], %479 {strides = array<i32>} : memref<1x8x2x128xf32, #tpu.memory_space<vmem>>, vector<1x1x2x128xf32>,
    return
  }
  func.func @transform_0(%arg0: i32, %arg1: i32) -> (i32, i32, i32, i32) {
    %c0_i32 = arith.constant 0 : i32
    %c0_i32_0 = arith.constant 0 : i32
    %c0_i32_1 = arith.constant 0 : i32
    return %arg0, %c0_i32, %arg1, %c0_i32_0 : i32, i32, i32, i32
  }
  func.func @transform_1(%arg0: i32, %arg1: i32) -> (i32, i32) {
    %c0_i32 = arith.constant 0 : i32
    %c0_i32_0 = arith.constant 0 : i32
    %c0_i32_1 = arith.constant 0 : i32
    return %c0_i32, %c0_i32_0 : i32, i32
  }
  func.func @transform_2(%arg0: i32, %arg1: i32) -> i32 {
    %c0_i32 = arith.constant 0 : i32
    %c0_i32_0 = arith.constant 0 : i32
    return %c0_i32 : i32
  }
  func.func @transform_3(%arg0: i32, %arg1: i32) -> (i32, i32) {
    %c0_i32 = arith.constant 0 : i32
    %c0_i32_0 = arith.constant 0 : i32
    %c0_i32_1 = arith.constant 0 : i32
    return %c0_i32, %c0_i32_0 : i32, i32
  }
  func.func @transform_4(%arg0: i32, %arg1: i32) -> i32 {
    %c0_i32 = arith.constant 0 : i32
    %c0_i32_0 = arith.constant 0 : i32
    return %c0_i32 : i32
  }
  func.func @transform_5(%arg0: i32, %arg1: i32) -> (i32, i32, i32, i32) {
    %c0_i32 = arith.constant 0 : i32
    %c0_i32_0 = arith.constant 0 : i32
    %c0_i32_1 = arith.constant 0 : i32
    return %arg0, %c0_i32, %arg1, %c0_i32_0 : i32, i32, i32, i32
  }
}

</mosaic_0001>

<bundles_post_ra>
// kernel: tpu_custom_call.1
= control target key start
LH: loop header
LB: loop body
LE: loop exit
PB: predicated region body
PF: predicated region fallthrough
CT: control target
= control target key end

     0   :  { %s1945_s0 = inlined_call_operand.hbm [shape: f32[2,4,2,128], index: 0, kind: input, shape index: {}]   ;;  %s1946_s1 = inlined_call_operand.hbm [shape: f32[4,8], index: 1, kind: input, shape index: {}]   ;;  %s1947_s2 = inlined_call_operand.vmem [shape: f32[8], index: 2, kind: input, shape index: {}]   ;;  %s1948_s3 = inlined_call_operand.hbm [shape: f32[8,8], index: 3, kind: input, shape index: {}]   ;;  %s1949_s4 = inlined_call_operand.vmem [shape: f32[8], index: 4, kind: input, shape index: {}]   ;;  %s1950_s5 = inlined_call_operand.hbm [shape: f32[2,8,2,128], index: 5, kind: output, shape index: {}]  }
   0x1   :  { %1952 = sst [smem:[#allocation21_spill]] %s1945_s0 }
   0x2   :  { %1953 = sst [smem:[#allocation22_spill]] %s1946_s1 }
   0x3   :  { %1954 = sst [smem:[#allocation23_spill]] %s1947_s2 }
   0x4   :  { %1955 = sst [smem:[#allocation24_spill]] %s1948_s3 }
   0x5   :  { %1956 = sst [smem:[#allocation25_spill]] %s1949_s4 }
   0x6   :  { %10 = vsyncpa [#allocation3], 0 }
   0x7   :  { %12 = vsyncpa [#allocation3 + $0x1], 0 }
   0x8   :  { %13 = vsyncpa [#allocation5], 0 }
   0x9   :  { %14 = vsyncpa [#allocation6], 0 }
   0xa   :  { %15 = vsyncpa [#allocation10], 0 }
   0xb   :  { %16 = vsyncpa [#allocation12], 0 }
   0xc   :  { %17 = vsyncpa [#allocation4], 0 }
   0xd   :  { %19 = vsyncpa [#allocation4 + $0x1], 0  ;;  %s1375_s18 = smov 0   ;;  %s1377_s19 = smov 0  }
   0xe   :  { %s1379_s20 = smov 0   ;;  %s1381_s21 = smov 0  }
   0xf   :  { %s1383_s22 = smov 0   ;;  %s1385_s23 = smov 0  }
  0x10 LB: > { %s907_s24 = sadd.s32 4294967295, %s1333_s23   ;;  %s908_s25 = sadd.s32 4294967294, %s1333_s23   ;;  %s1333_s23 = sphi %s1385_s23, %s25_s23   ;;  %s1329_s22 = sphi %s1383_s22, %s1978_s22   ;;  %s1325_s21 = sphi %s1381_s21, %s1977_s21   ;;  %s1321_s20 = sphi %s1379_s20, %s1976_s20   ;;  %s1317_s19 = sphi %s1377_s19, %s1975_s19   ;;  %s1313_s18 = sphi %s1375_s18, %s1974_s18  }
  0x11   : > { %p59_p0 = scmp.ne.s32.totalorder %s1317_s19, %s1313_s18  ;;  %p1409_p1 = scmp.eq.s32.totalorder %s907_s24, 0 }
  0x12   : > { %p1413_p2 = scmp.eq.s32.totalorder %s907_s24, 1  ;;  %p175_p3 = scmp.eq.s32.totalorder %s908_s25, 1 }
  0x13   : > { %p1419_p4 = por %p1409_p1, %p59_p0  ;;  %p909_p5 = scmp.ge.s32.totalorder %s1333_s23, 1 }
  0x14   : > { %p1424_p6 = por %p175_p3, %p59_p0  ;;  %p182_p7 = scmp.lt.s32.totalorder %s1333_s23, 3 }
  0x15   : > { %s1962_s2 = sld [smem:[#allocation23_spill]]  ;;  %s1335_s13 = smov [#allocation7]  }
  0x16   : > { %s1960_s29 = scalar_select %p1424_p6, 1, 0 }
  0x17   : > { %p1429_p8 = pnand %p909_p5, %p182_p7  ;;  %s1963_s4 = sld [smem:[#allocation25_spill]] }
  0x18   : > { %s1965_s1 = sld [smem:[#allocation22_spill]] }
  0x19   : > { %p1070_p10 = pneg %p1429_p8 }
  0x1b   : > { %s204_s8 = sshll.u32 %s1962_s2, 4  ;;  %p1444_p11 = pnand %p1070_p10, %p1409_p1  ;;  %s205_s8 = int_to_ptr.vmem [resolvable:$true] %s204_s8 }
  0x1c   : > { %s1168_s16 = scalar_lea.vmem %s205_s8, 16  ;;  %p1176_p5 = scmp.lt.s32.totalorder %s205_s8, %s205_s8 }
  0x1d   : > { %s224_s11 = sshll.u32 %s1963_s4, 4  ;;  %p1169_p12 = scmp.ne.s32.totalorder %s205_s8, %s1168_s16  ;;  %s225_s11 = int_to_ptr.vmem [resolvable:$true] %s224_s11 }
  0x1e   : > { %1073 = dma.hbm_to_smem (!%p1444_p11), %s1965_s1, 64, %s1335_s13, [#allocation5]  }
  0x1f   : > { %p1170_p13 = pneg %p1444_p11  ;;  %p1177_p7 = scmp.lt.s32.totalorder %s1168_s16, %s1168_s16 }
  0x21   : > { %p1171_p0 = pnand %p1170_p13, %p1169_p12  ;;  %p1178_p10 = por %p1177_p7, %p1176_p5 }
  0x23   : > { %p1172_p3 = pneg %p1171_p0 }
  0x25   : > { %p1179_p9 = pnand %p1178_p10, %p1172_p3 }
  0x27   : > { %1182 = shalt.err (!%p1179_p9)
}
  0x28   : > { %s1336_s17 = smov [#allocation8]   ;;  %s1337_s24 = smov [#allocation9]  }
  0x29   : > { %1076 = dma.vmem_to_smem (!%p1444_p11), %s205_s8, 16, %s1336_s17, [#allocation6]  }
  0x2a   : > { %s1966_s3 = sld [smem:[#allocation24_spill]]  ;;  %s1194_s7 = scalar_lea.vmem %s225_s11, 16 }
  0x2b   : > { %p1195_p12 = scmp.ne.s32.totalorder %s225_s11, %s1194_s7  ;;  %p1202_p3 = scmp.lt.s32.totalorder %s225_s11, %s225_s11 }
  0x2c   : > { %p1203_p9 = scmp.lt.s32.totalorder %s1194_s7, %s1194_s7 }
  0x2d   : > { %p1197_p0 = pnand %p1195_p12, %p1170_p13 }
  0x2e   : > { %p1204_p7 = por %p1203_p9, %p1202_p3 }
  0x2f   : > { %p1198_p5 = pneg %p1197_p0 }
  0x30   : > { %1079 = dma.hbm_to_smem (!%p1444_p11), %s1966_s3, 128, %s1337_s24, [#allocation10]  }
  0x31   : > { %p1205_p10 = pnand %p1204_p7, %p1198_p5 }
  0x33   : > { %1208 = shalt.err (!%p1205_p10)
}
  0x34   : > { %s1338_s9 = smov [#allocation11]   ;;  %s37_s8 = sadd.s32 1, %s1329_s22 }
  0x35   : > { %1082 = dma.vmem_to_smem (!%p1444_p11), %s225_s11, 16, %s1338_s9, [#allocation12]  }
  0x36   : > { %s46_s10 = sadd.s32 1, %s1321_s20  ;;  %p39_p13 = scmp.ge.s32.totalorder %s37_s8, 2 }
  0x37   : > { %p53_p12 = scmp.ne.s32.totalorder %s1321_s20, %s1317_s19  ;;  %p54_p0 = scmp.eq.s32.totalorder %s1333_s23, 0 }
  0x38   : > { %p1095_p5 = scmp.lt.s32.totalorder %s1333_s23, 2  ;;  %s1980_s8 = smov (%p39_p13, %s37_s8), 0 }
  0x39   : > { %1967 = sst [smem:[#allocation20_spill]] %s1980_s8  ;;  %p55_p3 = por %p54_p0, %p53_p12 }
  0x3a   : > { %p1480_p9 = por %p1413_p2, %p53_p12  ;;  %s41_s13 = ssub.s32 %s1329_s22, %s1980_s8 }
  0x3b   : > { %s235_s14 = sand.u32 1, %s1321_s20   ;;  %p44_p7 = scmp.eq.s32.totalorder %s41_s13, 0 }
  0x3c   : > { %s915_s11 = sshll.u32 %s235_s14, 3  ;;  %s1048_s15 = sshll.u32 %s1329_s22, 7 }
  0x3d   : > { %s1489_s16 = scalar_select %p44_p7, %s1321_s20, %s46_s10  }
  0x3e   : > { %s1969_s0 = sld [smem:[#allocation21_spill]]  ;;  %s239_s6 = scalar_lea.vmem [#allocation2], %s915_s11 }
  0x3f   : > { %s247_s7 = sshll.u32 %s239_s6, 4  ;;  %p1496_p11 = pnand %p1095_p5, %p55_p3  ;;  %s248_s7 = int_to_ptr.vmem [resolvable:$true] %s247_s7 }
  0x40   : > { %s236_s9 = scalar_lea.sflag [#allocation3], %s235_s14  ;;  %s1222_s13 = scalar_lea.vmem %s248_s7, 128 }
  0x41   : > { %p1211_p2 = pneg %p1496_p11  ;;  %p1223_p10 = scmp.ne.s32.totalorder %s248_s7, %s1222_s13 }
  0x42   : > { %s1339_s10 = smov [#allocation2]  }
  0x43   : > { %p1225_p13 = pnand %p1223_p10, %p1211_p2  ;;  %s1227_s1 = sshll.u32 %s1339_s10, 4  ;;  %s1228_s1 = int_to_ptr.vmem [resolvable:$false] %s1227_s1 }
  0x44   : > { %s246_s25 = scalar_lea.hbm %s1969_s0, %s1048_s15  ;;  %s1229_s15 = scalar_lea.vmem %s1228_s1, 256 }
  0x45   : > { %p1226_p12 = pneg %p1225_p13  ;;  %p1230_p0 = scmp.lt.s32.totalorder %s248_s7, %s1228_s1 }
  0x46   : > { %p1231_p7 = scmp.lt.s32.totalorder %s1229_s15, %s1222_s13 }
  0x48   : > { %p1232_p6 = por %p1231_p7, %p1230_p0 }
  0x4a   : > { %p1233_p5 = pnand %p1232_p6, %p1226_p12 }
  0x4c   : > { %1236 = shalt.err (!%p1233_p5)
}
  0x4d   : > { %s1340_s11 = smov 32   ;;  %s1341_s17 = smov 2  }
  0x4e   : > { %1086 = dma.hbm_to_vmem [thread:$0]  (!%p1496_p11), %s246_s25, 128, %s248_s7, %s236_s9, %s1340_s11, %s1340_s11, %s1341_s17  }
  0x4f   : > { %259 = sbr.rel (%p1429_p8) target bundleno = 240 (0xf0), region = 40  ;;  %s1507_s14 = sand.u32 (!%p1429_p8), 1, %s1317_s19  }
  0x50   : > { %s919_s24 = sshll.u32 (!%p1429_p8), %s1507_s14, 3  ;;  %s262_s1 = scalar_lea.sflag (!%p1429_p8), [#allocation3], %s1507_s14 }
  0x51   : > { %s1511_s6 = scalar_lea.vmem (!%p1429_p8), [#allocation2], %s919_s24 }
  0x54   : > { %1288 = dma.done.wait (%p1419_p4), %s262_s1, 128  }
  0x55   : > { %1290 = vsyncadd (%p1419_p4), %s262_s1, 4294967168 }
  0x56   : > { %1292 = dma.done.wait (%p1409_p1), [#allocation5], 64  }
  0x57   : > { %1294 = vsyncadd (%p1409_p1), [#allocation5], 4294967232 }
  0x58   : > { %1296 = dma.done.wait (%p1409_p1), [#allocation6], 16  }
  0x59   : > { %1298 = vsyncadd (%p1409_p1), [#allocation6], 4294967280 }
  0x5a   : > { %1300 = dma.done.wait (%p1409_p1), [#allocation10], 128  }
  0x5b   : > { %1302 = vsyncadd (%p1409_p1), [#allocation10], 4294967168 }
  0x5c   : > { %1304 = dma.done.wait (%p1409_p1), [#allocation12], 16  }
  0x5d   : > { %1306 = vsyncadd (%p1409_p1), [#allocation12], 4294967280 }
  0x5e   : > { %286 = sfence }
  0x5f   : > { %s316_s28 = sld [smem:[#allocation7]]  ;;  %v1556_v0 = vld [vmem:[%s1511_s6] sm:$0x3]  ;;  %v1559_v1 = vld [vmem:[%s1511_s6 + $0x2] sm:$0x3] }
  0x60   : > { %s928_s30 = sld [smem:[#allocation7 + $0x80]]  ;;  %v1568_v4 = vld [vmem:[%s1511_s6 + $0x4] sm:$0x3]  ;;  %v1587_v15 = vld [vmem:[%s1511_s6 + $0x6] sm:$0x3] }
  0x61   : > { %s929_s25 = sld [smem:[#allocation7 + $0x100]] }
  0x62   : > { %s1533_s7 = sld [smem:[#allocation7 + $0x180]] }
  0x63   : > { %s1535_s27 = sld [smem:[#allocation8]] }
  0x64   : > { %s1537_s9 = sld [smem:[#allocation7 + $0x1]] }
  0x65   : > { %s1539_s13 = sld [smem:[#allocation7 + $0x81]]  ;;  %v317_v2 = vstv %s316_s28 }
  0x66   : > { %s1541_s10 = sld [smem:[#allocation7 + $0x101]]  ;;  %v320_v3 = vstv %s928_s30  ;;  %v318_v5 = vmul.f32 %v317_v2, %v1556_v0 }
  0x67   : > { %s1543_s15 = sld [smem:[#allocation7 + $0x181]]  ;;  %v321_v6 = vmul.f32 %v1559_v1, %v320_v3  ;;  %v324_v7 = vstv %s929_s25 }
  0x68   : > { %s1545_s26 = sld [smem:[#allocation8 + $0x1]]  ;;  %v325_v10 = vmul.f32 %v1568_v4, %v324_v7  ;;  %v328_v12 = vstv %s1533_s7 }
  0x69   : > { %s1547_s11 = sld [smem:[#allocation7 + $0x2]]  ;;  %v322_v11 = vadd.f32 %v321_v6, %v318_v5  ;;  %v329_v25 = vmul.f32 %v1587_v15, %v328_v12  ;;  %v332_v40 = vstv %s1535_s27 }
  0x6a   : > { %s1549_s17 = sld [smem:[#allocation7 + $0x82]]  ;;  %v336_v8 = vstv %s1537_s9 }
  0x6b   : > { %s1551_s24 = sld [smem:[#allocation7 + $0x102]]  ;;  %v339_v9 = vstv %s1539_s13  ;;  %v337_v16 = vmul.f32 %v336_v8, %v1556_v0  ;;  %v326_v24 = vadd.f32 %v325_v10, %v322_v11 }
  0x6c   : > { %s1553_s1 = sld [smem:[#allocation7 + $0x182]]  ;;  %v340_v17 = vmul.f32 %v1559_v1, %v339_v9  ;;  %v343_v20 = vstv %s1541_s10 }
  0x6d   : > { %s1561_s0 = sld [smem:[#allocation8 + $0x2]]  ;;  %v344_v29 = vmul.f32 %v1568_v4, %v343_v20  ;;  %v347_v32 = vstv %s1543_s15  ;;  %v330_v43 = vadd.f32 %v329_v25, %v326_v24 }
  0x6e   : > { %s1563_s2 = sld [smem:[#allocation7 + $0x3]]  ;;  %v341_v28 = vadd.f32 %v340_v17, %v337_v16  ;;  %v348_v45 = vmul.f32 %v1587_v15, %v347_v32  ;;  %v351_v60 = vstv %s1545_s26 }
  0x6f   : > { %s1565_s3 = sld [smem:[#allocation7 + $0x83]]  ;;  %v355_v13 = vstv %s1547_s11  ;;  %v333_v59 = vadd.f32 %v332_v40, %v330_v43 }
  0x70   : > { %s1572_s28 = sld [smem:[#allocation7 + $0x103]]  ;;  %v358_v14 = vstv %s1549_s17  ;;  %v356_v21 = vmul.f32 %v355_v13, %v1556_v0  ;;  %v345_v44 = vadd.f32 %v344_v29, %v341_v28 }
  0x71   : > { %s1574_s30 = sld [smem:[#allocation7 + $0x183]]  ;;  %v359_v22 = vmul.f32 %v1559_v1, %v358_v14  ;;  %v362_v23 = vstv %s1551_s24  ;;  %v1676_v25 = vmax.f32 %v333_v59, 0.0 }
  0x72   : > { %s1578_s4 = sld [smem:[#allocation8 + $0x3]]  ;;  %v363_v33 = vmul.f32 %v1568_v4, %v362_v23  ;;  %v366_v37 = vstv %s1553_s1  ;;  %v349_v5 = vadd.f32 %v348_v45, %v345_v44 }
  0x73   : > { %s946_s8 = sld [smem:[#allocation7 + $0x4]]  ;;  %v360_v36 = vadd.f32 %v359_v22, %v356_v21  ;;  %v367_v47 = vmul.f32 %v1587_v15, %v366_v37  ;;  %v370_v7 = vstv %s1561_s0 }
  0x74   : > { %s1584_s25 = sld [smem:[#allocation7 + $0x84]]  ;;  %v374_v18 = vstv %s1563_s2  ;;  %v352_v21 = vadd.f32 %v351_v60, %v349_v5 }
  0x75   : > { %v377_v19 = vstv %s1565_s3  ;;  %s1593_s9 = sld [smem:[#allocation7 + $0x104]]  ;;  %v375_v26 = vmul.f32 %v374_v18, %v1556_v0  ;;  %v364_v51 = vadd.f32 %v363_v33, %v360_v36 }
  0x76   : > { %s1596_s13 = sld [smem:[#allocation7 + $0x184]]  ;;  %v378_v27 = vmul.f32 %v1559_v1, %v377_v19  ;;  %v381_v30 = vstv %s1572_s28  ;;  %v1690_v37 = vmax.f32 %v352_v21, 0.0 }
  0x77   : > { %s1601_s6 = sld [smem:[#allocation8 + $0x4]]  ;;  %v382_v42 = vmul.f32 %v1568_v4, %v381_v30  ;;  %v385_v46 = vstv %s1574_s30  ;;  %v368_v6 = vadd.f32 %v367_v47, %v364_v51 }
  0x78   : > { %s1606_s2 = sld [smem:[#allocation7 + $0x5]]  ;;  %v379_v41 = vadd.f32 %v378_v27, %v375_v26  ;;  %v386_v56 = vmul.f32 %v1587_v15, %v385_v46  ;;  %v389_v10 = vstv %s1578_s4 }
  0x79   : > { %v393_v31 = vstv %s946_s8  ;;  %s1610_s3 = sld [smem:[#allocation7 + $0x85]]  ;;  %v371_v26 = vadd.f32 %v370_v7, %v368_v6 }
  0x7a   : > { %v394_v34 = vmul.f32 %v393_v31, %v1556_v0  ;;  %v396_v35 = vstv %s1584_s25  ;;  %s1616_s7 = sld [smem:[#allocation7 + $0x105]]  ;;  %v383_v55 = vadd.f32 %v382_v42, %v379_v41 }
  0x7b   : > { %v397_v38 = vmul.f32 %v1559_v1, %v396_v35  ;;  %v400_v39 = vstv %s1593_s9  ;;  %s1621_s10 = sld [smem:[#allocation7 + $0x185]] }
  0x7c   : > { %s1625_s8 = sld [smem:[#allocation8 + $0x5]]  ;;  %v401_v49 = vmul.f32 %v1568_v4, %v400_v39  ;;  %v404_v52 = vstv %s1596_s13  ;;  %v387_v9 = vadd.f32 %v386_v56, %v383_v55 }
  0x7d   : > { %s1629_s15 = sld [smem:[#allocation7 + $0x6]]  ;;  %v398_v48 = vadd.f32 %v397_v38, %v394_v34  ;;  %v405_v63 = vmul.f32 %v1587_v15, %v404_v52  ;;  %v408_v22 = vstv %s1601_s6 }
  0x7e   : > { %v412_v50 = vstv %s1606_s2  ;;  %s1634_s27 = sld [smem:[#allocation7 + $0x86]]  ;;  %v390_v27 = vadd.f32 %v389_v10, %v387_v9 }
  0x7f   : > { %v413_v53 = vmul.f32 %v412_v50, %v1556_v0  ;;  %v415_v54 = vstv %s1610_s3  ;;  %s1639_s11 = sld [smem:[#allocation7 + $0x106]]  ;;  %v402_v62 = vadd.f32 %v401_v49, %v398_v48 }
  0x80   : > { %v416_v57 = vmul.f32 %v1559_v1, %v415_v54  ;;  %v419_v58 = vstv %s1616_s7  ;;  %s1644_s17 = sld [smem:[#allocation7 + $0x186]]  ;;  %v1702_v43 = vmax.f32 %v390_v27, 0.0 }
  0x81   : > { %v420_v61 = vmul.f32 %v1568_v4, %v419_v58  ;;  %s1648_s24 = sld [smem:[#allocation8 + $0x6]]  ;;  %v423_v3 = vstv %s1621_s10  ;;  %v406_v18 = vadd.f32 %v405_v63, %v402_v62 }
  0x82   : > { %v417_v2 = vadd.f32 %v416_v57, %v413_v53  ;;  %s1652_s1 = sld [smem:[#allocation7 + $0x7]]  ;;  %v424_v14 = vmul.f32 %v1587_v15, %v423_v3  ;;  %v427_v34 = vstv %s1625_s8 }
  0x83   : > { %v431_v8 = vstv %s1629_s15  ;;  %s1656_s28 = sld [smem:[#allocation7 + $0x87]]  ;;  %v409_v33 = vadd.f32 %v408_v22, %v406_v18 }
  0x84   : > { %v432_v11 = vmul.f32 %v431_v8, %v1556_v0  ;;  %v434_v12 = vstv %s1634_s27  ;;  %s1661_s26 = sld [smem:[#allocation7 + $0x107]]  ;;  %v421_v13 = vadd.f32 %v420_v61, %v417_v2 }
  0x85   : > { %v435_v16 = vmul.f32 %v1559_v1, %v434_v12  ;;  %v438_v17 = vstv %s1639_s11  ;;  %s1666_s30 = sld [smem:[#allocation7 + $0x187]] }
  0x86   : > { %v439_v19 = vmul.f32 %v1568_v4, %v438_v17  ;;  %v442_v20 = vstv %s1644_s17  ;;  %s1670_s0 = sld [smem:[#allocation8 + $0x7]]  ;;  %v425_v29 = vadd.f32 %v424_v14, %v421_v13 }
  0x87   : > { %v436_v23 = vadd.f32 %v435_v16, %v432_v11  ;;  %v443_v24 = vmul.f32 %v1587_v15, %v442_v20  ;;  %s1674_s4 = sld [smem:[#allocation9]]  ;;  %v446_v41 = vstv %s1648_s24 }
  0x88   : > { %v450_v28 = vstv %s1652_s1  ;;  %s1679_s25 = sld [smem:[#allocation9 + $0x80]]  ;;  %v428_v44 = vadd.f32 %v427_v34, %v425_v29 }
  0x89   : > { %v440_v30 = vadd.f32 %v439_v19, %v436_v23  ;;  %v451_v31 = vmul.f32 %v450_v28, %v1556_v0  ;;  %v453_v32 = vstv %s1656_s28  ;;  %s1683_s9 = sld [smem:[#allocation9 + $0x100]]  ;;  %v1696_v0 = vmax.f32 %v371_v26, 0.0 }
  0x8a   : > { %v454_v35 = vmul.f32 %v1559_v1, %v453_v32  ;;  %v457_v36 = vstv %s1661_s26  ;;  %s1688_s13 = sld [smem:[#allocation9 + $0x180]]  ;;  %v1720_v55 = vmax.f32 %v428_v44, 0.0 }
  0x8b   : > { %v444_v38 = vadd.f32 %v443_v24, %v440_v30  ;;  %v458_v39 = vmul.f32 %v1568_v4, %v457_v36  ;;  %v461_v40 = vstv %s1666_s30  ;;  %s1694_s6 = sld [smem:[#allocation9 + $0x200]]  ;;  %v1707_v4 = vmax.f32 %v409_v33, 0.0 }
  0x8c   : > { %v455_v42 = vadd.f32 %v454_v35, %v451_v31  ;;  %v462_v1 = vmul.f32 %v1587_v15, %v461_v40  ;;  %s1700_s2 = sld [smem:[#allocation9 + $0x280]]  ;;  %v465_v49 = vstv %s1670_s0 }
  0x8d   : > { %v469_v45 = vstv %s1674_s4  ;;  %s1705_s3 = sld [smem:[#allocation9 + $0x300]]  ;;  %v447_v15 = vadd.f32 %v446_v41, %v444_v38 }
  0x8e   : > { %v459_v46 = vadd.f32 %v458_v39, %v455_v42  ;;  %v470_v47 = vmul.f32 %v469_v45, %v1676_v25  ;;  %v472_v48 = vstv %s1679_s25  ;;  %s1711_s7 = sld [smem:[#allocation9 + $0x380]] }
  0x8f   : > { %v473_v50 = vmul.f32 %v472_v48, %v1690_v37  ;;  %v476_v51 = vstv %s1683_s9  ;;  %s1716_s10 = sld [smem:[#allocation11]]  ;;  %v1725_v61 = vmax.f32 %v447_v15, 0.0  ;;  %s924_s9 = sshll.u32 %s1507_s14, 4 }
  0x90   : > { %v463_v52 = vadd.f32 %v462_v1, %v459_v46  ;;  %v477_v53 = vmul.f32 %v476_v51, %v1696_v0  ;;  %v480_v54 = vstv %s1688_s13  ;;  %s973_s8 = sld [smem:[#allocation9 + $0x1]] }
  0x91   : > { %v474_v56 = vadd.f32 %v473_v50, %v470_v47  ;;  %v481_v57 = vmul.f32 %v480_v54, %v1702_v43  ;;  %v484_v58 = vstv %s1694_s6  ;;  %s974_s15 = sld [smem:[#allocation9 + $0x81]] }
  0x92   : > { %v466_v59 = vadd.f32 %v465_v49, %v463_v52  ;;  %v488_v60 = vstv %s1700_s2  ;;  %s975_s27 = sld [smem:[#allocation9 + $0x101]]  ;;  %v485_v63 = vmul.f32 %v484_v58, %v1707_v4 }
  0x93   : > { %v478_v62 = vadd.f32 %v477_v53, %v474_v56  ;;  %s976_s11 = sld [smem:[#allocation9 + $0x181]]  ;;  %v492_v2 = vstv %s1705_s3  ;;  %v489_v6 = vmul.f32 %v488_v60, %v1720_v55 }
  0x94   : > { %s977_s17 = sld [smem:[#allocation9 + $0x201]]  ;;  %v1729_v3 = vmax.f32 %v466_v59, 0.0  ;;  %v496_v7 = vstv %s1711_s7  ;;  %v493_v10 = vmul.f32 %v492_v2, %v1725_v61 }
  0x95   : > { %v482_v5 = vadd.f32 %v481_v57, %v478_v62  ;;  %s1732_s24 = sld [smem:[#allocation9 + $0x281]]  ;;  %v500_v26 = vstv %s1716_s10 }
  0x96   : > { %v505_v8 = vstv %s973_s8  ;;  %s1735_s1 = sld [smem:[#allocation9 + $0x301]]  ;;  %v497_v17 = vmul.f32 %v496_v7, %v1729_v3  ;;  %s1769_s8 = scalar_lea.vmem [#allocation13], %s924_s9 }
  0x97   : > { %v486_v9 = vadd.f32 %v485_v63, %v482_v5  ;;  %v506_v11 = vmul.f32 %v505_v8, %v1676_v25  ;;  %v508_v12 = vstv %s974_s15  ;;  %s1739_s28 = sld [smem:[#allocation9 + $0x381]] }
  0x98   : > { %v509_v13 = vmul.f32 %v508_v12, %v1690_v37  ;;  %v512_v14 = vstv %s975_s27  ;;  %s1742_s26 = sld [smem:[#allocation11 + $0x1]] }
  0x99   : > { %v490_v16 = vadd.f32 %v489_v6, %v486_v9  ;;  %v513_v18 = vmul.f32 %v512_v14, %v1696_v0  ;;  %v516_v19 = vstv %s976_s11  ;;  %s983_s30 = sld [smem:[#allocation9 + $0x2]] }
  0x9a   : > { %v510_v20 = vadd.f32 %v509_v13, %v506_v11  ;;  %v517_v21 = vmul.f32 %v516_v19, %v1702_v43  ;;  %v520_v22 = vstv %s977_s17  ;;  %s984_s0 = sld [smem:[#allocation9 + $0x82]] }
  0x9b   : > { %v494_v23 = vadd.f32 %v493_v10, %v490_v16  ;;  %v524_v24 = vstv %s1732_s24  ;;  %s985_s4 = sld [smem:[#allocation9 + $0x102]]  ;;  %v521_v28 = vmul.f32 %v520_v22, %v1707_v4 }
  0x9c   : > { %v514_v27 = vadd.f32 %v513_v18, %v510_v20  ;;  %s986_s25 = sld [smem:[#allocation9 + $0x182]]  ;;  %v528_v30 = vstv %s1735_s1  ;;  %v525_v32 = vmul.f32 %v524_v24, %v1720_v55 }
  0x9d   : > { %v498_v29 = vadd.f32 %v497_v17, %v494_v23  ;;  %s1752_s13 = sld [smem:[#allocation9 + $0x202]]  ;;  %v532_v34 = vstv %s1739_s28  ;;  %v529_v38 = vmul.f32 %v528_v30, %v1725_v61 }
  0x9e   : > { %v518_v31 = vadd.f32 %v517_v21, %v514_v27  ;;  %s1755_s6 = sld [smem:[#allocation9 + $0x282]]  ;;  %v533_v45 = vmul.f32 %v532_v34, %v1729_v3  ;;  %v536_v52 = vstv %s1742_s26 }
  0x9f   : > { %v501_v33 = vadd.f32 %v500_v26, %v498_v29  ;;  %v542_v35 = vstv %s983_s30  ;;  %s1758_s2 = sld [smem:[#allocation9 + $0x302]] }
  0xa0   : > { %v522_v36 = vadd.f32 %v521_v28, %v518_v31  ;;  %v543_v39 = vmul.f32 %v542_v35, %v1676_v25  ;;  %v545_v40 = vstv %s984_s0  ;;  %s1762_s3 = sld [smem:[#allocation9 + $0x382]] }
  0xa1   : > { %v502_v41 = vmax.f32 %v501_v33, 0.0  ;;  %v546_v42 = vmul.f32 %v545_v40, %v1690_v37  ;;  %v549_v1 = vstv %s985_s4  ;;  %s1765_s7 = sld [smem:[#allocation11 + $0x2]] }
  0xa2   : > { %v526_v44 = vadd.f32 %v525_v32, %v522_v36  ;;  %v550_v46 = vmul.f32 %v549_v1, %v1696_v0  ;;  %v553_v47 = vstv %s986_s25  ;;  %s993_s10 = sld [smem:[#allocation9 + $0x3]] }
  0xa3   : > { %503 = vst [vmem:[%s1769_s8] sm:$0x3] %v502_v41  ;;  %v547_v48 = vadd.f32 %v546_v42, %v543_v39  ;;  %v554_v15 = vmul.f32 %v553_v47, %v1702_v43  ;;  %v557_v49 = vstv %s1752_s13  ;;  %s994_s15 = sld [smem:[#allocation9 + $0x83]] }
  0xa4   : > { %v530_v50 = vadd.f32 %v529_v38, %v526_v44  ;;  %v561_v51 = vstv %s1755_s6  ;;  %s995_s27 = sld [smem:[#allocation9 + $0x103]]  ;;  %v558_v54 = vmul.f32 %v557_v49, %v1707_v4 }
  0xa5   : > { %v551_v53 = vadd.f32 %v550_v46, %v547_v48  ;;  %s996_s11 = sld [smem:[#allocation9 + $0x183]]  ;;  %v565_v57 = vstv %s1758_s2  ;;  %v562_v59 = vmul.f32 %v561_v51, %v1720_v55 }
  0xa6   : > { %v534_v56 = vadd.f32 %v533_v45, %v530_v50  ;;  %s1778_s17 = sld [smem:[#allocation9 + $0x203]]  ;;  %v569_v62 = vstv %s1762_s3  ;;  %v566_v5 = vmul.f32 %v565_v57, %v1725_v61 }
  0xa7   : > { %v555_v58 = vadd.f32 %v554_v15, %v551_v53  ;;  %s1781_s24 = sld [smem:[#allocation9 + $0x283]]  ;;  %v570_v12 = vmul.f32 %v569_v62, %v1729_v3  ;;  %v573_v21 = vstv %s1765_s7 }
  0xa8   : > { %v537_v60 = vadd.f32 %v536_v52, %v534_v56  ;;  %v579_v63 = vstv %s993_s10  ;;  %s1784_s1 = sld [smem:[#allocation9 + $0x303]] }
  0xa9   : > { %v559_v2 = vadd.f32 %v558_v54, %v555_v58  ;;  %v580_v6 = vmul.f32 %v579_v63, %v1676_v25  ;;  %v582_v7 = vstv %s994_s15  ;;  %s1788_s28 = sld [smem:[#allocation9 + $0x383]] }
  0xaa   : > { %v538_v8 = vmax.f32 %v537_v60, 0.0  ;;  %v583_v9 = vmul.f32 %v582_v7, %v1690_v37  ;;  %v586_v10 = vstv %s995_s27  ;;  %s1791_s26 = sld [smem:[#allocation11 + $0x3]] }
  0xab   : > { %v563_v11 = vadd.f32 %v562_v59, %v559_v2  ;;  %v587_v13 = vmul.f32 %v586_v10, %v1696_v0  ;;  %v590_v14 = vstv %s996_s11  ;;  %s1003_s30 = sld [smem:[#allocation9 + $0x4]] }
  0xac   : > { %982 = vst [vmem:[%s1769_s8 + $0x2] sm:$0x3] %v538_v8  ;;  %v584_v16 = vadd.f32 %v583_v9, %v580_v6  ;;  %v591_v17 = vmul.f32 %v590_v14, %v1702_v43  ;;  %v594_v18 = vstv %s1778_s17  ;;  %s1004_s0 = sld [smem:[#allocation9 + $0x84]] }
  0xad   : > { %v567_v19 = vadd.f32 %v566_v5, %v563_v11  ;;  %v598_v20 = vstv %s1781_s24  ;;  %s1005_s4 = sld [smem:[#allocation9 + $0x104]]  ;;  %v595_v23 = vmul.f32 %v594_v18, %v1707_v4 }
  0xae   : > { %v588_v22 = vadd.f32 %v587_v13, %v584_v16  ;;  %s1006_s25 = sld [smem:[#allocation9 + $0x184]]  ;;  %v602_v26 = vstv %s1784_s1  ;;  %v599_v28 = vmul.f32 %v598_v20, %v1720_v55 }
  0xaf   : > { %v571_v24 = vadd.f32 %v570_v12, %v567_v19  ;;  %s1802_s9 = sld [smem:[#allocation9 + $0x204]]  ;;  %v606_v30 = vstv %s1788_s28  ;;  %v603_v33 = vmul.f32 %v602_v26, %v1725_v61 }
  0xb0   : > { %v592_v27 = vadd.f32 %v591_v17, %v588_v22  ;;  %s1805_s13 = sld [smem:[#allocation9 + $0x284]]  ;;  %v607_v41 = vmul.f32 %v606_v30, %v1729_v3  ;;  %v610_v15 = vstv %s1791_s26 }
  0xb1   : > { %v574_v29 = vadd.f32 %v573_v21, %v571_v24  ;;  %v616_v31 = vstv %s1003_s30  ;;  %s1808_s6 = sld [smem:[#allocation9 + $0x304]] }
  0xb2   : > { %v596_v32 = vadd.f32 %v595_v23, %v592_v27  ;;  %v617_v34 = vmul.f32 %v616_v31, %v1676_v25  ;;  %v619_v35 = vstv %s1004_s0  ;;  %s1812_s2 = sld [smem:[#allocation9 + $0x384]] }
  0xb3   : > { %v575_v36 = vmax.f32 %v574_v29, 0.0  ;;  %v620_v38 = vmul.f32 %v619_v35, %v1690_v37  ;;  %v623_v39 = vstv %s1005_s4  ;;  %s1815_s3 = sld [smem:[#allocation11 + $0x4]] }
  0xb4   : > { %v600_v40 = vadd.f32 %v599_v28, %v596_v32  ;;  %v624_v42 = vmul.f32 %v623_v39, %v1696_v0  ;;  %v627_v1 = vstv %s1006_s25  ;;  %s1013_s7 = sld [smem:[#allocation9 + $0x5]] }
  0xb5   : > { %992 = vst [vmem:[%s1769_s8 + $0x4] sm:$0x3] %v575_v36  ;;  %v621_v44 = vadd.f32 %v620_v38, %v617_v34  ;;  %v628_v45 = vmul.f32 %v627_v1, %v1702_v43  ;;  %v631_v46 = vstv %s1802_s9  ;;  %s1014_s10 = sld [smem:[#allocation9 + $0x85]] }
  0xb6   : > { %v604_v47 = vadd.f32 %v603_v33, %v600_v40  ;;  %v635_v48 = vstv %s1805_s13  ;;  %s1015_s15 = sld [smem:[#allocation9 + $0x105]]  ;;  %v632_v50 = vmul.f32 %v631_v46, %v1707_v4 }
  0xb7   : > { %v625_v49 = vadd.f32 %v624_v42, %v621_v44  ;;  %s1016_s27 = sld [smem:[#allocation9 + $0x185]]  ;;  %v639_v52 = vstv %s1808_s6  ;;  %v636_v54 = vmul.f32 %v635_v48, %v1720_v55 }
  0xb8   : > { %v608_v51 = vadd.f32 %v607_v41, %v604_v47  ;;  %s1826_s11 = sld [smem:[#allocation9 + $0x205]]  ;;  %v643_v57 = vstv %s1812_s2  ;;  %v640_v60 = vmul.f32 %v639_v52, %v1725_v61 }
  0xb9   : > { %v629_v53 = vadd.f32 %v628_v45, %v625_v49  ;;  %s1829_s17 = sld [smem:[#allocation9 + $0x285]]  ;;  %v644_v8 = vmul.f32 %v643_v57, %v1729_v3  ;;  %v647_v17 = vstv %s1815_s3 }
  0xba   : > { %v611_v56 = vadd.f32 %v610_v15, %v608_v51  ;;  %v653_v58 = vstv %s1013_s7  ;;  %s1832_s24 = sld [smem:[#allocation9 + $0x305]] }
  0xbb   : > { %v633_v59 = vadd.f32 %v632_v50, %v629_v53  ;;  %v654_v62 = vmul.f32 %v653_v58, %v1676_v25  ;;  %v656_v63 = vstv %s1014_s10  ;;  %s1836_s1 = sld [smem:[#allocation9 + $0x385]] }
  0xbc   : > { %v612_v2 = vmax.f32 %v611_v56, 0.0  ;;  %v657_v5 = vmul.f32 %v656_v63, %v1690_v37  ;;  %v660_v6 = vstv %s1015_s15  ;;  %s1839_s28 = sld [smem:[#allocation11 + $0x5]] }
  0xbd   : > { %v637_v7 = vadd.f32 %v636_v54, %v633_v59  ;;  %v661_v9 = vmul.f32 %v660_v6, %v1696_v0  ;;  %v664_v10 = vstv %s1016_s27  ;;  %s1023_s26 = sld [smem:[#allocation9 + $0x6]] }
  0xbe   : > { %1002 = vst [vmem:[%s1769_s8 + $0x6] sm:$0x3] %v612_v2  ;;  %v658_v11 = vadd.f32 %v657_v5, %v654_v62  ;;  %v665_v12 = vmul.f32 %v664_v10, %v1702_v43  ;;  %v668_v13 = vstv %s1826_s11  ;;  %s1024_s30 = sld [smem:[#allocation9 + $0x86]] }
  0xbf   : > { %v641_v14 = vadd.f32 %v640_v60, %v637_v7  ;;  %v672_v16 = vstv %s1829_s17  ;;  %s1025_s0 = sld [smem:[#allocation9 + $0x106]]  ;;  %v669_v19 = vmul.f32 %v668_v13, %v1707_v4 }
  0xc0   : > { %v662_v18 = vadd.f32 %v661_v9, %v658_v11  ;;  %s1026_s4 = sld [smem:[#allocation9 + $0x186]]  ;;  %v676_v21 = vstv %s1832_s24  ;;  %v673_v23 = vmul.f32 %v672_v16, %v1720_v55 }
  0xc1   : > { %v645_v20 = vadd.f32 %v644_v8, %v641_v14  ;;  %s1850_s25 = sld [smem:[#allocation9 + $0x206]]  ;;  %v680_v26 = vstv %s1836_s1  ;;  %v677_v29 = vmul.f32 %v676_v21, %v1725_v61 }
  0xc2   : > { %v666_v22 = vadd.f32 %v665_v12, %v662_v18  ;;  %s1853_s9 = sld [smem:[#allocation9 + $0x286]]  ;;  %v681_v36 = vmul.f32 %v680_v26, %v1729_v3  ;;  %v684_v45 = vstv %s1839_s28  ;;  %s778_s28 = sshll.u32 %s1769_s8, 4  ;;  %s1891_s28 = int_to_ptr.vmem [resolvable:$true] %s778_s28 }
  0xc3   : > { %v648_v24 = vadd.f32 %v647_v17, %v645_v20  ;;  %v690_v27 = vstv %s1023_s26  ;;  %s1856_s13 = sld [smem:[#allocation9 + $0x306]]  ;;  %s1049_s26 = sshll.u32 %s1325_s21, 8 }
  0xc4   : > { %v670_v28 = vadd.f32 %v669_v19, %v666_v22  ;;  %v691_v30 = vmul.f32 %v690_v27, %v1676_v25  ;;  %v693_v31 = vstv %s1024_s30  ;;  %s1860_s6 = sld [smem:[#allocation9 + $0x386]]  ;;  %s1342_s21 = smov [#allocation13]  }
  0xc5   : > { %v649_v32 = vmax.f32 %v648_v24, 0.0  ;;  %v694_v33 = vmul.f32 %v693_v31, %v1690_v37  ;;  %v697_v34 = vstv %s1025_s0  ;;  %s1863_s2 = sld [smem:[#allocation11 + $0x6]] }
  0xc6   : > { %v674_v35 = vadd.f32 %v673_v23, %v670_v28  ;;  %v698_v38 = vmul.f32 %v697_v34, %v1696_v0  ;;  %v701_v39 = vstv %s1026_s4  ;;  %s1033_s3 = sld [smem:[#allocation9 + $0x7]]  ;;  %s1896_s4 = scalar_lea.hbm %s1950_s5, %s1049_s26 }
  0xc7   : > { %1012 = vst [vmem:[%s1769_s8 + $0x8] sm:$0x3] %v649_v32  ;;  %v695_v40 = vadd.f32 %v694_v33, %v691_v30  ;;  %v702_v41 = vmul.f32 %v701_v39, %v1702_v43  ;;  %v705_v42 = vstv %s1850_s25  ;;  %s1034_s7 = sld [smem:[#allocation9 + $0x87]]  ;;  %s764_s25 = scalar_lea.sflag [#allocation4], %s1507_s14 }
  0xc8   : > { %v678_v1 = vadd.f32 %v677_v29, %v674_v35  ;;  %v709_v44 = vstv %s1853_s9  ;;  %s1035_s10 = sld [smem:[#allocation9 + $0x107]]  ;;  %v706_v47 = vmul.f32 %v705_v42, %v1707_v4  ;;  %s1237_s9 = scalar_lea.vmem %s1891_s28, 256 }
  0xc9   : > { %v699_v46 = vadd.f32 %v698_v38, %v695_v40  ;;  %s1036_s15 = sld [smem:[#allocation9 + $0x187]]  ;;  %v713_v15 = vstv %s1856_s13  ;;  %v710_v50 = vmul.f32 %v709_v44, %v1720_v55  ;;  %p1238_p1 = scmp.ne.s32.totalorder %s1891_s28, %s1237_s9 }
  0xca   : > { %v682_v48 = vadd.f32 %v681_v36, %v678_v1  ;;  %s1037_s27 = sld [smem:[#allocation9 + $0x207]]  ;;  %v717_v52 = vstv %s1860_s6  ;;  %v714_v56 = vmul.f32 %v713_v15, %v1725_v61  ;;  %s1241_s13 = sshll.u32 %s1342_s21, 4  ;;  %s1242_s13 = int_to_ptr.vmem [resolvable:$false] %s1241_s13 }
  0xcb   : > { %v703_v49 = vadd.f32 %v702_v41, %v699_v46  ;;  %s1038_s11 = sld [smem:[#allocation9 + $0x287]]  ;;  %v718_v2 = vmul.f32 %v717_v52, %v1729_v3  ;;  %v721_v11 = vstv %s1863_s2  ;;  %p1239_p4 = pnand %p1238_p1, %p1480_p9 }
  0xcc   : > { %v685_v51 = vadd.f32 %v684_v45, %v682_v48  ;;  %v727_v53 = vstv %s1033_s3  ;;  %s1039_s17 = sld [smem:[#allocation9 + $0x307]]  ;;  %s1243_s6 = scalar_lea.vmem %s1242_s13, 512 }
  0xcd   : > { %v707_v54 = vadd.f32 %v706_v47, %v703_v49  ;;  %v728_v57 = vmul.f32 %v727_v53, %v1676_v25  ;;  %v730_v58 = vstv %s1034_s7  ;;  %s1040_s24 = sld [smem:[#allocation9 + $0x387]]  ;;  %p1240_p6 = pneg %p1239_p4 }
  0xce   : > { %v686_v59 = vmax.f32 %v685_v51, 0.0  ;;  %v731_v60 = vmul.f32 %v730_v58, %v1690_v37  ;;  %v734_v62 = vstv %s1035_s10  ;;  %s1041_s1 = sld [smem:[#allocation11 + $0x7]]  ;;  %p1244_p8 = scmp.lt.s32.totalorder %s1891_s28, %s1242_s13 }
  0xcf   : > { %v711_v63 = vadd.f32 %v710_v50, %v707_v54  ;;  %v735_v5 = vmul.f32 %v734_v62, %v1696_v0  ;;  %v738_v6 = vstv %s1036_s15  ;;  %p1245_p3 = scmp.lt.s32.totalorder %s1243_s6, %s1237_s9 }
  0xd0   : > { %1022 = vst [vmem:[%s1769_s8 + $0xa] sm:$0x3] %v686_v59  ;;  %v732_v7 = vadd.f32 %v731_v60, %v728_v57  ;;  %v739_v8 = vmul.f32 %v738_v6, %v1702_v43  ;;  %v742_v9 = vstv %s1037_s27 }
  0xd1   : > { %v715_v10 = vadd.f32 %v714_v56, %v711_v63  ;;  %v746_v25 = vstv %s1038_s11  ;;  %v743_v37 = vmul.f32 %v742_v9, %v1707_v4  ;;  %p1246_p11 = por %p1245_p3, %p1244_p8 }
  0xd2   : > { %v736_v12 = vadd.f32 %v735_v5, %v732_v7  ;;  %v750_v14 = vstv %s1039_s17  ;;  %v747_v0 = vmul.f32 %v746_v25, %v1720_v55 }
  0xd3   : > { %v719_v13 = vadd.f32 %v718_v2, %v715_v10  ;;  %v754_v18 = vstv %s1040_s24  ;;  %v751_v19 = vmul.f32 %v750_v14, %v1725_v61  ;;  %p1247_p2 = pnand %p1246_p11, %p1240_p6 }
  0xd4   : > { %v740_v16 = vadd.f32 %v739_v8, %v736_v12  ;;  %v755_v22 = vmul.f32 %v754_v18, %v1729_v3  ;;  %v758_v23 = vstv %s1041_s1 }
  0xd5   : > { %v722_v17 = vadd.f32 %v721_v11, %v719_v13 }
  0xd6   : > { %v744_v43 = vadd.f32 %v743_v37, %v740_v16 }
  0xd7   : > { %v723_v20 = vmax.f32 %v722_v17, 0.0 }
  0xd8   : > { %v748_v21 = vadd.f32 %v747_v0, %v744_v43 }
  0xd9   : > { %1032 = vst [vmem:[%s1769_s8 + $0xc] sm:$0x3] %v723_v20 }
  0xda   : > { %v752_v4 = vadd.f32 %v751_v19, %v748_v21 }
  0xdc   : > { %v756_v24 = vadd.f32 %v755_v22, %v752_v4 }
  0xde   : > { %v759_v55 = vadd.f32 %v758_v23, %v756_v24 }
  0xe0   : > { %v760_v61 = vmax.f32 %v759_v55, 0.0 }
  0xe2   : > { %1042 = vst [vmem:[%s1769_s8 + $0xe] sm:$0x3] %v760_v61 }
  0xe3   : > { %1250 = shalt.err (!%p1247_p2)
}
  0xe4   : > { %s1251_s8 = scalar_lea.hbm %s1896_s4, 256  ;;  %s1255_s7 = scalar_lea.hbm %s1950_s5, 512 }
  0xe5   : > { %p1252_p10 = scmp.ne.s32.totalorder %s1896_s4, %s1251_s8  ;;  %p1256_p0 = scmp.lt.s32.totalorder %s1896_s4, %s1950_s5 }
  0xe6   : > { %p1257_p7 = scmp.lt.s32.totalorder %s1255_s7, %s1251_s8 }
  0xe7   : > { %p1253_p13 = pnand %p1252_p10, %p1480_p9 }
  0xe8   : > { %p1258_p5 = por %p1257_p7, %p1256_p0 }
  0xe9   : > { %p1254_p12 = pneg %p1253_p13 }
  0xeb   : > { %p1259_p1 = pnand %p1258_p5, %p1254_p12 }
  0xed   : > { %1262 = shalt.err (!%p1259_p1)
}
  0xee   : > { %s1343_s27 = smov 32   ;;  %s1344_s11 = smov 2  }
  0xef   : > { %1068 = dma.vmem_to_hbm [thread:$0]  (%p1480_p9), %s1891_s28, 256, %s1896_s4, %s764_s25, %s1343_s27, %s1343_s27, %s1344_s11  }
  0xf0 PF: > { %s793_s17 = sand.u32 1, %s1313_s18   ;;  %p1971_p4 = scmp.ne.s32.totalorder %s1960_s29, 0 }
  0xf1   : > { %p1972_p6 = scmp.ge.s32.totalorder %s1333_s23, 2  ;;  %s794_s24 = scalar_lea.sflag [#allocation4], %s793_s17 }
  0xf3   : > { %p1088_p8 = pnand %p1972_p6, %p1971_p4 }
  0xf5   : > { %p1089_p3 = pneg %p1088_p8 }
  0xf7   : > { %1308 = dma.done.wait (%p1089_p3), %s794_s24, 256  }
  0xf8   : > { %1310 = vsyncadd (%p1089_p3), %s794_s24, 4294967040  ;;  %s25_s23 = sadd.s32 1, %s1333_s23   ;;  %s1973_s12 = sld [smem:[#allocation20_spill]] }
  0xf9   : > { %p22_p11 = scmp.ge.s32.totalorder %s25_s23, 4   ;;  %s1974_s18 = smov %s1317_s19 }
  0xfa   : > { %s1975_s19 = smov %s1321_s20  ;;  %s1976_s20 = smov %s1489_s16 }
  0xfb   : > { %s1977_s21 = smov %s1329_s22  ;;  %24 = sbr.rel (!%p22_p11) target bundleno = 16 (0x10), region = 113 }
  0xfe   : > { %s1978_s22 = smov %s1973_s12 }
 0x100   :  { %799 = vsyncpa [#allocation3], 1 }
 0x101   :  { %801 = vsyncpa [#allocation3 + $0x1], 1 }
 0x102   :  { %802 = vsyncpa [#allocation4], 1 }
 0x103   :  { %804 = vsyncpa [#allocation4 + $0x1], 1 }
 0x104   :  { %805 = vsyncpa [#allocation5], 1 }
 0x105   :  { %807 = vsyncpa [#allocation5 + $0x1], 1 }
 0x106   :  { %808 = vsyncpa [#allocation10], 1 }
 0x107   :  { %809 = vsyncpa [#allocation6], 1 }
 0x108   :  { %811 = vsyncpa [#allocation6 + $0x1], 1 }
 0x109   :  { %812 = vsyncpa [#allocation12], 1 }

</bundles_post_ra>
